<compile_context>
chip_gen: v7x
topology: tpu7x:2x2x1
jax: 0.10.0
libtpu: 0.0.40
codegen_flags: <defaults>
</compile_context>

<pallas_src>
import math
import functools

import jax
import jax.numpy as jnp
import numpy as np
from jax.experimental import pallas as pl
from jax.experimental.pallas import tpu as pltpu


# --------------------------------------------------------------------------
# Config (mirrors cfg['network'] of the PyTorch module, at small sizes)
# --------------------------------------------------------------------------
CFG = dict(
    global_latent_dim=16,
    latent_dim=16,            # local latent dim
    num_heads=4,
    num_layers=4,             # number of hidden layers
    hidden_dim=64,
    octaves_pe_points=4,
    octaves_pe_views=4,       # unused in the default forward path
    skips=(2,),
    feat_size=8,
    geometric_init=False,     # synthetic deterministic init instead
    bias=0.6,
)

DIM = 3
DIM_EMBED = DIM + DIM * CFG["octaves_pe_points"] * 2            # 27
LATENT_DIM = CFG["latent_dim"] + CFG["global_latent_dim"]       # 32
DIMS_GEO = ([DIM_EMBED + LATENT_DIM]
            + [CFG["hidden_dim"]] * CFG["num_layers"]
            + [1 + CFG["feat_size"]])                           # [59,64,64,64,64,9]
NUM_LIN = len(DIMS_GEO) - 1                                     # 5 linear layers
SKIPS = tuple(CFG["skips"])
INV_SQRT2 = 1.0 / math.sqrt(2.0)
D0_FULL = DIMS_GEO[0]                                           # 59
D0_KERNEL = DIM_EMBED + CFG["latent_dim"]                       # 43 (global latent folded out)
D0_AUG = D0_KERNEL + 1                                          # 44 (+ ones row: folded biases)

assert 0 not in SKIPS and (NUM_LIN - 1) not in SKIPS


def _layer_out_dim(l):
    return DIMS_GEO[l + 1] - DIMS_GEO[0] if (l + 1) in SKIPS else DIMS_GEO[l + 1]


# Row layout of the stacked x_in weight: [layer-0 rows | w_in rows of each skip layer]
_OUT0 = _layer_out_dim(0)                                       # 64
_SKIP_ROWS = {}
_off = _OUT0
for _l in SKIPS:
    _SKIP_ROWS[_l] = (_off, _layer_out_dim(_l))
    _off += _layer_out_dim(_l)
STACK_ROWS = _off                                               # 128


# --------------------------------------------------------------------------
# Small helpers
# --------------------------------------------------------------------------
def _round_up(x, m):
    return ((x + m - 1) // m) * m


def _pe_feats(p, L, axis):
    """UNISURF-style PE: [p, sin(2^0 p), cos(2^0 p), ..., sin(2^{L-1} p), cos(2^{L-1} p)]."""
    out = [p]
    for i in range(L):
        out.append(jnp.sin((2.0 ** i) * p))
        out.append(jnp.cos((2.0 ** i) * p))
    return jnp.concatenate(out, axis=axis)


def _head_mixed(params, global_latent, l):
    """param = softmax(linp_l(global_latent)); W = sum_h param[h] * W_h (same for b)."""
    logits = global_latent @ params[f"Wp{l}"].T + params[f"bp{l}"]       # (H,)
    p = jax.nn.softmax(logits, axis=0)
    W = jnp.einsum("h,hoi->oi", p, params[f"W{l}"])                      # (out, in)
    b = jnp.einsum("h,ho->o", p, params[f"b{l}"])                        # (out,)
    return W, b


# --------------------------------------------------------------------------
# Pallas kernel: the whole conditioned-MLP hot path (feature-major layout)
# --------------------------------------------------------------------------
def _make_kernel(num_lin, skips, out0, skip_rows, compute_dtype):
    def _act(y):
        # torch.nn.Softplus(beta=100), threshold=20.  For the bf16 streaming path the
        # transcendental also runs in bf16 (v6e/v7x bf16 EUP/VPU); matmul acc stays f32.
        x = y.astype(compute_dtype)
        z = 100.0 * x
        return jnp.where(z > 20.0, x,
                         jnp.log1p(jnp.exp(jnp.minimum(z, 20.0))) / 100.0)

    def kernel(*refs):
        x_ref, occ_ref = refs[0], refs[-1]
        x_aug = x_ref[...]                                    # (D0_AUG, T): [pe; local; ones]
        # One MXU pass over x_in covers layer 0 AND every skip layer's w_in; the 1/sqrt(2)
        # scaling, biases and global-latent terms are folded into the weight (ones column).
        proj = jnp.dot(refs[1][...], x_aug,
                       preferred_element_type=jnp.float32)    # (STACK_ROWS, T) f32
        h = _act(proj[:out0, :])                              # layer 0
        idx = 2
        for l in range(1, num_lin):
            if l in skips:
                w_x = refs[idx][...]                          # (out, d_x), 1/sqrt(2) folded
                idx += 1
                off, rows = skip_rows[l]
                y = (jnp.dot(w_x, h, preferred_element_type=jnp.float32)
                     + proj[off:off + rows, :])
            elif l == num_lin - 1:
                # Only the sdf row is needed: multiply + sublane reduce on VPU/XLU,
                # leaving the MXU slot free.
                # TODO(synk): switch to an MXU matmul if a bundle dump shows VALU/XLU
                #             binding with MXU slack.
                w = refs[idx][...]                            # (hidden, 1) f32
                b = refs[idx + 1][...]                        # (1, 1)      f32
                idx += 2
                y = jnp.sum(h.astype(jnp.float32) * w, axis=0, keepdims=True) + b
            else:
                w = refs[idx][...]                            # (out, in)
                b = refs[idx + 1][...]                        # (out, 1) f32
                idx += 2
                y = jnp.dot(w, h, preferred_element_type=jnp.float32) + b
            h = _act(y) if l < num_lin - 1 else y             # last y is (1, T) f32 sdf
        # forward(): occupancy = sigmoid(output[..., :1] * -10.0) -> lane-dense (1,T) store
        occ_ref[...] = jax.nn.sigmoid(h.astype(jnp.float32) * -10.0)
    return kernel


def _grid_plan(n, tile_n):
    """Pick (tile, n_pad): 128-lane aligned tiles, >=2 grid steps whenever there is enough
    work (so the "parallel" axis splits across the two v7x TensorCores), minimal padding."""
    n128 = _round_up(n, 128)
    steps = max(1, -(-n128 // tile_n))
    if n128 >= 256:
        steps = max(steps, 2)
    tile = _round_up(-(-n128 // steps), 128)
    return tile, steps * tile


def _mlp_pallas(x_fm, layer_args, *, tile_n, compute_dtype):
    """x_fm: (D0_AUG, N) feature-major input.  Returns occupancy (N,) float32."""
    d0, n = x_fm.shape
    tile, n_pad = _grid_plan(n, tile_n)
    if n_pad != n:
        x_fm = jnp.pad(x_fm, ((0, 0), (0, n_pad - n)))        # pad instead of asserting
    x_fm = x_fm.astype(compute_dtype)

    flat_args = [x_fm] + list(layer_args)
    in_specs = [pl.BlockSpec((d0, tile), lambda i: (0, i))]
    for a in layer_args:
        # constant index_map -> fetched once, VMEM-resident across the whole grid
        in_specs.append(pl.BlockSpec(a.shape, lambda i: (0, 0)))

    occ = pl.pallas_call(
        _make_kernel(NUM_LIN, SKIPS, _OUT0, _SKIP_ROWS, compute_dtype),
        out_shape=jax.ShapeDtypeStruct((1, n_pad), jnp.float32),
        grid=(n_pad // tile,),
        in_specs=in_specs,
        out_specs=pl.BlockSpec((1, tile), lambda i: (0, i)),
        compiler_params=pltpu.CompilerParams(
            dimension_semantics=("parallel",),                 # point tiles -> 2 TCs on v7x
            vmem_limit_bytes=48 * 1024 * 1024),                # headroom for tile_n sweeps
    )(*flat_args)
    return occ[0, :n]


# --------------------------------------------------------------------------
# Parameter setup + input processing (glue, plain JAX)
# --------------------------------------------------------------------------
def init_params(key):
    params = {}
    for l in range(NUM_LIN):
        out_dim = _layer_out_dim(l)
        in_dim = DIMS_GEO[l]
        key, k1, k2, k3, k4 = jax.random.split(key, 5)
        scale = 1.0 / math.sqrt(in_dim)
        # num_heads sets of (W, b) like lin_l{l}_h{h}_{w,b}
        params[f"W{l}"] = jax.random.normal(k1, (CFG["num_heads"], out_dim, in_dim),
                                            jnp.float32) * scale
        params[f"b{l}"] = jax.random.normal(k2, (CFG["num_heads"], out_dim),
                                            jnp.float32) * scale
        # linp_l{l}: Linear(global_latent_dim, num_heads)
        params[f"Wp{l}"] = jax.random.normal(k3, (CFG["num_heads"], CFG["global_latent_dim"]),
                                             jnp.float32) * (1.0 / math.sqrt(CFG["global_latent_dim"]))
        params[f"bp{l}"] = jax.random.normal(k4, (CFG["num_heads"],), jnp.float32) * 0.1
    return params


def _process_input_fm(points, local_latent):
    """Feature-major kernel input (D0_AUG, N) = [PE(points); local_latent; ones]."""
    R, P, _ = points.shape
    n = R * P
    p_t = points.reshape(n, DIM).T / 1.0                         # rescale = 1, (3, N)
    pe = _pe_feats(p_t, CFG["octaves_pe_points"], axis=0)        # (27, N)
    ll = local_latent.reshape(CFG["latent_dim"], n)              # (16, N): channel-first already
    ones = jnp.ones((1, n), points.dtype)                        # carries the folded biases
    return jnp.concatenate([pe, ll, ones], axis=0)               # (44, N)


def _kernel_layer_args(params, global_latent, compute_dtype):
    """Flat arg list in the kernel's ref order.

    args[0] : stacked x_in weight (STACK_ROWS, D0_AUG).  Rows [0,64): layer-0 weight over
              [pe;local] with bias column = b0 + W0[:,43:] @ gl.  Per-skip rows: w_in/sqrt2
              with bias column = b_l + (W_l_gl @ gl)/sqrt2.
    then, per l in 1..NUM_LIN-1:
        skip layer -> (w_x / sqrt2,) ; last layer -> (W[:1].T f32, b[:1] f32) ;
        otherwise  -> (W, b[:,None] f32).
    """
    mixed = [_head_mixed(params, global_latent, l) for l in range(NUM_LIN)]
    gl = global_latent

    blocks = []
    W0, b0 = mixed[0]
    blocks.append(jnp.concatenate(
        [W0[:, :D0_KERNEL], (b0 + W0[:, D0_KERNEL:] @ gl)[:, None]], axis=1))
    for l in SKIPS:
        Wl, bl = mixed[l]
        d_x = DIMS_GEO[l] - DIMS_GEO[0]
        w_in = Wl[:, d_x:d_x + D0_KERNEL] * INV_SQRT2
        col = bl + INV_SQRT2 * (Wl[:, d_x + D0_KERNEL:] @ gl)
        blocks.append(jnp.concatenate([w_in, col[:, None]], axis=1))
    args = [jnp.concatenate(blocks, axis=0).astype(compute_dtype)]   # (128, 44)

    for l in range(1, NUM_LIN):
        Wl, bl = mixed[l]
        if l in SKIPS:
            d_x = DIMS_GEO[l] - DIMS_GEO[0]
            args.append((Wl[:, :d_x] * INV_SQRT2).astype(compute_dtype))
        elif l == NUM_LIN - 1:
            # default forward only uses output[..., :1] -> keep only the sdf row
            args.append(Wl[:1, :].T.astype(jnp.float32))              # (hidden, 1)
            args.append(bl[:1, None].astype(jnp.float32))             # (1, 1)
        else:
            args.append(Wl.astype(compute_dtype))
            args.append(bl[:, None].astype(jnp.float32))
    return args


@functools.partial(jax.jit, static_argnames=("compute_dtype", "tile_n"))
def cond_mlp_decoder_forward(points, local_latent, global_latent, params,
                             *, compute_dtype=jnp.float32, tile_n=4096):
    """Default forward: returns occupancy (R, P, 1).  feature_vec / rgb paths disabled."""
    R, P, _ = points.shape
    x_fm = _process_input_fm(points, local_latent)
    layer_args = _kernel_layer_args(params, global_latent, compute_dtype)
    occ = _mlp_pallas(x_fm, layer_args, tile_n=tile_n, compute_dtype=compute_dtype)
    return occ.reshape(R, P, 1)


# --------------------------------------------------------------------------
# Pure-JAX reference (literal PyTorch math: broadcast gl, concat on the skip)
# --------------------------------------------------------------------------
def _softplus_beta100_f32(x):
    z = 100.0 * x
    return jnp.where(z > 20.0, x, jnp.log1p(jnp.exp(jnp.minimum(z, 20.0))) / 100.0)


def _process_input_ref(points, local_latent, global_latent):
    R, P, _ = points.shape
    pe = _pe_feats(points / 1.0, CFG["octaves_pe_points"], axis=-1)       # (R,P,27)
    ll = jnp.transpose(local_latent, (1, 2, 0))                           # (R,P,16)
    gl = jnp.broadcast_to(global_latent[None, None, :],
                          (R, P, CFG["global_latent_dim"]))               # (R,P,16)
    return jnp.concatenate([pe, ll, gl], axis=-1)                         # (R,P,59)


def reference_forward(points, local_latent, global_latent, params):
    R, P, _ = points.shape
    x_in = _process_input_ref(points, local_latent, global_latent).reshape(R * P, D0_FULL)
    x = x_in
    for l in range(NUM_LIN):
        W, b = _head_mixed(params, global_latent, l)
        if l in SKIPS:
            x = jnp.concatenate([x, x_in], axis=-1) / math.sqrt(2.0)
        x = x @ W.T + b
        if l < NUM_LIN - 1:
            x = _softplus_beta100_f32(x)
    occ = jax.nn.sigmoid(x[:, :1] * -10.0)
    return occ.reshape(R, P, 1)


# --------------------------------------------------------------------------
# Test
# --------------------------------------------------------------------------
if __name__ == "__main__":
    key = jax.random.PRNGKey(0)
    key, kp, k1, k2, k3 = jax.random.split(key, 5)
    params = init_params(kp)
    global_latent = jax.random.normal(k3, (CFG["global_latent_dim"],), jnp.float32)

    # Case 1: tiny (128 points -> single 128-lane tile)
    R, P = 8, 16
    points = jax.random.uniform(k1, (R, P, 3), jnp.float32, -1.0, 1.0)
    local_latent = jax.random.normal(k2, (CFG["latent_dim"], R, P), jnp.float32)
    occ = jax.block_until_ready(
        cond_mlp_decoder_forward(points, local_latent, global_latent, params))
    occ_ref = jax.block_until_ready(
        reference_forward(points, local_latent, global_latent, params))
    np.testing.assert_allclose(np.asarray(occ), np.asarray(occ_ref), rtol=2e-4, atol=2e-4)
    assert occ.shape == (R, P, 1) and occ.dtype == jnp.float32

    # Case 2: N = 2400 (not lane-aligned) -> 2 parallel grid steps of 1280 lanes + padding
    key, k4, k5 = jax.random.split(key, 3)
    R2, P2 = 24, 100
    points2 = jax.random.uniform(k4, (R2, P2, 3), jnp.float32, -1.0, 1.0)
    local2 = jax.random.normal(k5, (CFG["latent_dim"], R2, P2), jnp.float32)
    occ2 = jax.block_until_ready(
        cond_mlp_decoder_forward(points2, local2, global_latent, params))
    occ2_ref = jax.block_until_ready(
        reference_forward(points2, local2, global_latent, params))
    np.testing.assert_allclose(np.asarray(occ2), np.asarray(occ2_ref), rtol=2e-4, atol=2e-4)

    # Case 3: bf16 streaming path (f32 MXU accumulation, bf16 softplus/sigmoid inputs).
    # Drift-checked vs the f32 reference with absolute-error bounds (the output is a
    # saturating sigmoid in [0,1], so rtol on tiny values is not meaningful).
    occ_bf16 = jax.block_until_ready(
        cond_mlp_decoder_forward(points2, local2, global_latent, params,
                                 compute_dtype=jnp.bfloat16))
    assert occ_bf16.shape == (R2, P2, 1)
    assert bool(jnp.all(jnp.isfinite(occ_bf16)))
    assert bool(jnp.all((occ_bf16 >= 0.0) & (occ_bf16 <= 1.0)))
    err = np.abs(np.asarray(occ_bf16, np.float32) - np.asarray(occ2_ref, np.float32))
    assert err.max() < 0.25 and err.mean() < 0.03, (float(err.max()), float(err.mean()))

    print("KERNEL_OK")
</pallas_src>

<mosaic_0001>
module attributes {stable_mosaic.version = 11 : i64} {
  func.func @kernel(%arg0: i32, %arg1: memref<44x128xf32, #tpu.memory_space<vmem>>, %arg2: memref<128x44xf32, #tpu.memory_space<vmem>>, %arg3: memref<5x64xf32, #tpu.memory_space<vmem>>, %arg4: memref<5x1xf32, #tpu.memory_space<vmem>>, %arg5: memref<64x5xf32, #tpu.memory_space<vmem>>, %arg6: memref<64x64xf32, #tpu.memory_space<vmem>>, %arg7: memref<64x1xf32, #tpu.memory_space<vmem>>, %arg8: memref<64x1xf32, #tpu.memory_space<vmem>>, %arg9: memref<1x1xf32, #tpu.memory_space<vmem>>, %arg10: memref<1x128xf32, #tpu.memory_space<vmem>>) attributes {dimension_semantics = [#tpu.dimension_semantics<parallel>], iteration_bounds = array<i64: 1>, scalar_prefetch = 0 : i64, scratch_operands = 0 : i64, tpu.core_type = #tpu.core_type<tc>, window_params = [{transform_indices = @transform_0, window_bounds = array<i64: 44, 128>}, {pipeline_mode = #tpu.pipeline_mode<synchronous>, transform_indices = @transform_1, window_bounds = array<i64: 128, 44>}, {pipeline_mode = #tpu.pipeline_mode<synchronous>, transform_indices = @transform_2, window_bounds = array<i64: 5, 64>}, {pipeline_mode = #tpu.pipeline_mode<synchronous>, transform_indices = @transform_3, window_bounds = array<i64: 5, 1>}, {pipeline_mode = #tpu.pipeline_mode<synchronous>, transform_indices = @transform_4, window_bounds = array<i64: 64, 5>}, {pipeline_mode = #tpu.pipeline_mode<synchronous>, transform_indices = @transform_5, window_bounds = array<i64: 64, 64>}, {pipeline_mode = #tpu.pipeline_mode<synchronous>, transform_indices = @transform_6, window_bounds = array<i64: 64, 1>}, {pipeline_mode = #tpu.pipeline_mode<synchronous>, transform_indices = @transform_7, window_bounds = array<i64: 64, 1>}, {pipeline_mode = #tpu.pipeline_mode<synchronous>, transform_indices = @transform_8, window_bounds = array<i64: 1, 1>}, {transform_indices = @transform_9, window_bounds = array<i64: 1, 128>}]} {
    %c0 = arith.constant 0 : index
    %c0_0 = arith.constant 0 : index
    %0 = vector.load %arg1[%c0, %c0_0] : memref<44x128xf32, #tpu.memory_space<vmem>>, vector<44x128xf32>
    %c0_1 = arith.constant 0 : index
    %c0_2 = arith.constant 0 : index
    %1 = vector.load %arg2[%c0_1, %c0_2] : memref<128x44xf32, #tpu.memory_space<vmem>>, vector<128x44xf32>
    %cst = arith.constant dense<0.000000e+00> : vector<128x128xf32>
    %2 = tpu.matmul %1, %0, %cst {dimension_numbers = #tpu.dot_dimension_numbers<[1], [0], [0], [1], [0, 0, 1, 1], [], []>} : vector<128x44xf32>, vector<44x128xf32>, vector<128x128xf32> -> vector<128x128xf32>
    %3 = vector.extract_strided_slice %2 {offsets = [0, 0], sizes = [64, 128], strides = [1, 1]} : vector<128x128xf32> to vector<64x128xf32>
    %cst_3 = arith.constant 1.000000e+02 : f32
    %4 = vector.broadcast %cst_3 : f32 to vector<64x128xf32>
    %5 = arith.mulf %4, %3 : vector<64x128xf32>
    %cst_4 = arith.constant 2.000000e+01 : f32
    %6 = vector.broadcast %cst_4 : f32 to vector<64x128xf32>
    %7 = arith.cmpf ogt, %5, %6 : vector<64x128xf32>
    %cst_5 = arith.constant 2.000000e+01 : f32
    %8 = vector.broadcast %cst_5 : f32 to vector<64x128xf32>
    %9 = arith.minimumf %5, %8 : vector<64x128xf32>
    %10 = math.exp %9 : vector<64x128xf32>
    %11 = math.log1p %10 : vector<64x128xf32>
    %cst_6 = arith.constant 1.000000e+02 : f32
    %12 = vector.broadcast %cst_6 : f32 to vector<64x128xf32>
    %13 = arith.divf %11, %12 : vector<64x128xf32>
    %14 = arith.select %7, %3, %13 : vector<64x128xi1>, vector<64x128xf32>
    %c0_7 = arith.constant 0 : index
    %c0_8 = arith.constant 0 : index
    %15 = vector.load %arg3[%c0_7, %c0_8] : memref<5x64xf32, #tpu.memory_space<vmem>>, vector<5x64xf32>
    %c0_9 = arith.constant 0 : index
    %c0_10 = arith.constant 0 : index
    %16 = vector.load %arg4[%c0_9, %c0_10] : memref<5x1xf32, #tpu.memory_space<vmem>>, vector<5x1xf32>
    %cst_11 = arith.constant dense<0.000000e+00> : vector<5x128xf32>
    %17 = tpu.matmul %15, %14, %cst_11 {dimension_numbers = #tpu.dot_dimension_numbers<[1], [0], [0], [1], [0, 0, 1, 1], [], []>} : vector<5x64xf32>, vector<64x128xf32>, vector<5x128xf32> -> vector<5x128xf32>
    %18 = vector.broadcast %16 : vector<5x1xf32> to vector<5x128xf32>
    %19 = arith.addf %17, %18 : vector<5x128xf32>
    %cst_12 = arith.constant 1.000000e+02 : f32
    %20 = vector.broadcast %cst_12 : f32 to vector<5x128xf32>
    %21 = arith.mulf %20, %19 : vector<5x128xf32>
    %cst_13 = arith.constant 2.000000e+01 : f32
    %22 = vector.broadcast %cst_13 : f32 to vector<5x128xf32>
    %23 = arith.cmpf ogt, %21, %22 : vector<5x128xf32>
    %cst_14 = arith.constant 2.000000e+01 : f32
    %24 = vector.broadcast %cst_14 : f32 to vector<5x128xf32>
    %25 = arith.minimumf %21, %24 : vector<5x128xf32>
    %26 = math.exp %25 : vector<5x128xf32>
    %27 = math.log1p %26 : vector<5x128xf32>
    %cst_15 = arith.constant 1.000000e+02 : f32
    %28 = vector.broadcast %cst_15 : f32 to vector<5x128xf32>
    %29 = arith.divf %27, %28 : vector<5x128xf32>
    %30 = arith.select %23, %19, %29 : vector<5x128xi1>, vector<5x128xf32>
    %c0_16 = arith.constant 0 : index
    %c0_17 = arith.constant 0 : index
    %31 = vector.load %arg5[%c0_16, %c0_17] : memref<64x5xf32, #tpu.memory_space<vmem>>, vector<64x5xf32>
    %cst_18 = arith.constant dense<0.000000e+00> : vector<64x128xf32>
    %32 = tpu.matmul %31, %30, %cst_18 {dimension_numbers = #tpu.dot_dimension_numbers<[1], [0], [0], [1], [0, 0, 1, 1], [], []>} : vector<64x5xf32>, vector<5x128xf32>, vector<64x128xf32> -> vector<64x128xf32>
    %33 = vector.extract_strided_slice %2 {offsets = [64, 0], sizes = [64, 128], strides = [1, 1]} : vector<128x128xf32> to vector<64x128xf32>
    %34 = arith.addf %32, %33 : vector<64x128xf32>
    %cst_19 = arith.constant 1.000000e+02 : f32
    %35 = vector.broadcast %cst_19 : f32 to vector<64x128xf32>
    %36 = arith.mulf %35, %34 : vector<64x128xf32>
    %cst_20 = arith.constant 2.000000e+01 : f32
    %37 = vector.broadcast %cst_20 : f32 to vector<64x128xf32>
    %38 = arith.cmpf ogt, %36, %37 : vector<64x128xf32>
    %cst_21 = arith.constant 2.000000e+01 : f32
    %39 = vector.broadcast %cst_21 : f32 to vector<64x128xf32>
    %40 = arith.minimumf %36, %39 : vector<64x128xf32>
    %41 = math.exp %40 : vector<64x128xf32>
    %42 = math.log1p %41 : vector<64x128xf32>
    %cst_22 = arith.constant 1.000000e+02 : f32
    %43 = vector.broadcast %cst_22 : f32 to vector<64x128xf32>
    %44 = arith.divf %42, %43 : vector<64x128xf32>
    %45 = arith.select %38, %34, %44 : vector<64x128xi1>, vector<64x128xf32>
    %c0_23 = arith.constant 0 : index
    %c0_24 = arith.constant 0 : index
    %46 = vector.load %arg6[%c0_23, %c0_24] : memref<64x64xf32, #tpu.memory_space<vmem>>, vector<64x64xf32>
    %c0_25 = arith.constant 0 : index
    %c0_26 = arith.constant 0 : index
    %47 = vector.load %arg7[%c0_25, %c0_26] : memref<64x1xf32, #tpu.memory_space<vmem>>, vector<64x1xf32>
    %cst_27 = arith.constant dense<0.000000e+00> : vector<64x128xf32>
    %48 = tpu.matmul %46, %45, %cst_27 {dimension_numbers = #tpu.dot_dimension_numbers<[1], [0], [0], [1], [0, 0, 1, 1], [], []>} : vector<64x64xf32>, vector<64x128xf32>, vector<64x128xf32> -> vector<64x128xf32>
    %49 = vector.broadcast %47 : vector<64x1xf32> to vector<64x128xf32>
    %50 = arith.addf %48, %49 : vector<64x128xf32>
    %cst_28 = arith.constant 1.000000e+02 : f32
    %51 = vector.broadcast %cst_28 : f32 to vector<64x128xf32>
    %52 = arith.mulf %51, %50 : vector<64x128xf32>
    %cst_29 = arith.constant 2.000000e+01 : f32
    %53 = vector.broadcast %cst_29 : f32 to vector<64x128xf32>
    %54 = arith.cmpf ogt, %52, %53 : vector<64x128xf32>
    %cst_30 = arith.constant 2.000000e+01 : f32
    %55 = vector.broadcast %cst_30 : f32 to vector<64x128xf32>
    %56 = arith.minimumf %52, %55 : vector<64x128xf32>
    %57 = math.exp %56 : vector<64x128xf32>
    %58 = math.log1p %57 : vector<64x128xf32>
    %cst_31 = arith.constant 1.000000e+02 : f32
    %59 = vector.broadcast %cst_31 : f32 to vector<64x128xf32>
    %60 = arith.divf %58, %59 : vector<64x128xf32>
    %61 = arith.select %54, %50, %60 : vector<64x128xi1>, vector<64x128xf32>
    %c0_32 = arith.constant 0 : index
    %c0_33 = arith.constant 0 : index
    %62 = vector.load %arg8[%c0_32, %c0_33] : memref<64x1xf32, #tpu.memory_space<vmem>>, vector<64x1xf32>
    %c0_34 = arith.constant 0 : index
    %c0_35 = arith.constant 0 : index
    %63 = vector.load %arg9[%c0_34, %c0_35] : memref<1x1xf32, #tpu.memory_space<vmem>>, vector<1x1xf32>
    %64 = vector.broadcast %62 : vector<64x1xf32> to vector<64x128xf32>
    %65 = arith.mulf %61, %64 : vector<64x128xf32>
    %cst_36 = arith.constant dense<0.000000e+00> : vector<128xf32>
    %66 = vector.multi_reduction <add>, %65, %cst_36 [0] : vector<64x128xf32> to vector<128xf32>
    %67 = vector.shape_cast %66 : vector<128xf32> to vector<1x128xf32>
    %68 = vector.broadcast %63 : vector<1x1xf32> to vector<1x128xf32>
    %69 = arith.addf %67, %68 : vector<1x128xf32>
    %cst_37 = arith.constant -1.000000e+01 : f32
    %70 = vector.broadcast %cst_37 : f32 to vector<1x128xf32>
    %71 = arith.mulf %69, %70 : vector<1x128xf32>
    %72 = arith.negf %71 : vector<1x128xf32>
    %73 = math.exp %72 : vector<1x128xf32>
    %cst_38 = arith.constant 1.000000e+00 : f32
    %74 = vector.broadcast %cst_38 : f32 to vector<1x128xf32>
    %75 = arith.addf %74, %73 : vector<1x128xf32>
    %76 = arith.divf %74, %75 : vector<1x128xf32>
    %c0_39 = arith.constant 0 : index
    %c0_40 = arith.constant 0 : index
    %77 = vector.load %arg10[%c0_39, %c0_40] : memref<1x128xf32, #tpu.memory_space<vmem>>, vector<1x128xf32>
    tpu.vector_store %arg10[%c0_39, %c0_40], %76 {strides = array<i32>} : memref<1x128xf32, #tpu.memory_space<vmem>>, vector<1x128xf32>,
    return
  }
  func.func @transform_0(%arg0: i32) -> (i32, i32) {
    %c0_i32 = arith.constant 0 : i32
    %c0_i32_0 = arith.constant 0 : i32
    return %c0_i32, %arg0 : i32, i32
  }
  func.func @transform_1(%arg0: i32) -> (i32, i32) {
    %c0_i32 = arith.constant 0 : i32
    %c0_i32_0 = arith.constant 0 : i32
    %c0_i32_1 = arith.constant 0 : i32
    return %c0_i32, %c0_i32_0 : i32, i32
  }
  func.func @transform_2(%arg0: i32) -> (i32, i32) {
    %c0_i32 = arith.constant 0 : i32
    %c0_i32_0 = arith.constant 0 : i32
    %c0_i32_1 = arith.constant 0 : i32
    return %c0_i32, %c0_i32_0 : i32, i32
  }
  func.func @transform_3(%arg0: i32) -> (i32, i32) {
    %c0_i32 = arith.constant 0 : i32
    %c0_i32_0 = arith.constant 0 : i32
    %c0_i32_1 = arith.constant 0 : i32
    return %c0_i32, %c0_i32_0 : i32, i32
  }
  func.func @transform_4(%arg0: i32) -> (i32, i32) {
    %c0_i32 = arith.constant 0 : i32
    %c0_i32_0 = arith.constant 0 : i32
    %c0_i32_1 = arith.constant 0 : i32
    return %c0_i32, %c0_i32_0 : i32, i32
  }
  func.func @transform_5(%arg0: i32) -> (i32, i32) {
    %c0_i32 = arith.constant 0 : i32
    %c0_i32_0 = arith.constant 0 : i32
    %c0_i32_1 = arith.constant 0 : i32
    return %c0_i32, %c0_i32_0 : i32, i32
  }
  func.func @transform_6(%arg0: i32) -> (i32, i32) {
    %c0_i32 = arith.constant 0 : i32
    %c0_i32_0 = arith.constant 0 : i32
    %c0_i32_1 = arith.constant 0 : i32
    return %c0_i32, %c0_i32_0 : i32, i32
  }
  func.func @transform_7(%arg0: i32) -> (i32, i32) {
    %c0_i32 = arith.constant 0 : i32
    %c0_i32_0 = arith.constant 0 : i32
    %c0_i32_1 = arith.constant 0 : i32
    return %c0_i32, %c0_i32_0 : i32, i32
  }
  func.func @transform_8(%arg0: i32) -> (i32, i32) {
    %c0_i32 = arith.constant 0 : i32
    %c0_i32_0 = arith.constant 0 : i32
    %c0_i32_1 = arith.constant 0 : i32
    return %c0_i32, %c0_i32_0 : i32, i32
  }
  func.func @transform_9(%arg0: i32) -> (i32, i32) {
    %c0_i32 = arith.constant 0 : i32
    %c0_i32_0 = arith.constant 0 : i32
    return %c0_i32, %arg0 : i32, i32
  }
}

</mosaic_0001>

<bundles_post_ra>
// kernel: squeeze.1
= control target key start
LH: loop header
LB: loop body
LE: loop exit
PB: predicated region body
PF: predicated region fallthrough
CT: control target
= control target key end

     0   :  { %s135_s0 = inlined_call_operand.vmem [shape: f32[128], index: 0, kind: input, shape index: {}]   ;;  %s136_s1 = inlined_call_operand.hbm [shape: f32[8,16,1], index: 1, kind: output, shape index: {}]  }
   0x1   :  { %v5_v0 = vld [vmem:[%s135_s0] sm:$0x1] }
   0x2   :  { %6 = vst [vmem:[#allocation2] sm:$0x1] %v5_v0 }
   0x3   :  { %2 = vsyncpa [#allocation1], 0  ;;  %s94_s0 = smov 112   ;;  %s95_s8 = smov 80   ;;  %vm8_vm0 = vcmask 130048  }
   0x4   :  { %s96_s9 = smov 96   ;;  %s97_s10 = smov 64  }
   0x5   :  { %s98_s11 = smov 48   ;;  %s99_s12 = smov 32  }
   0x6   :  { %s100_s13 = smov 16   ;;  %s101_s14 = smov [#allocation0]  }
   0x7   :  { %s56_s15 = sshll.u32 %s101_s14, 4  ;;  %s57_s15 = int_to_ptr.vmem [resolvable:$true] %s56_s15 }
   0x8   :  { %s70_s16 = scalar_lea.vmem %s57_s15, 128  ;;  %p75_p1 = scmp.lt.s32.totalorder %s57_s15, %s57_s15 }
   0x9   :  { %v10_v1 = vld [vmem:[#allocation2] sm:$0x1]   ;;  %p71_p0 = scmp.ne.s32.totalorder %s57_s15, %s70_s16  ;;  %p76_p2 = scmp.lt.s32.totalorder %s70_s16, %s70_s16 }
   0xa   :  { %v22_v2 = vld [vmem:[#allocation2] sm:$0x1]   ;;  %11 = vrot.lane.b32.xlu0 %v10_v1, %s94_s0 }
   0xb   :  { %23 = vrot.lane.b32.xlu1 %v22_v2, %s95_s8  ;;  %v16_v3 = vld [vmem:[#allocation2] sm:$0x1]   ;;  %p77_p3 = por %p76_p2, %p75_p1 }
   0xc   :  { %v28_v4 = vld [vmem:[#allocation2] sm:$0x1]  }
   0xd   :  { %v7_v5 = vld [vmem:[#allocation2] sm:$0x1]   ;;  %p78_p4 = pnand %p77_p3, %p71_p0 }
   0xe   :  { %9 = vst.msk [vmem:[#allocation0] sm:$0x1] %vm8_vm0, %v7_v5   ;;  %17 = vrot.lane.b32.xlu0 %v16_v3, %s96_s9  ;;  %v34_v6 = vld [vmem:[#allocation2] sm:$0x1]  }
   0xf   :  { %29 = vrot.lane.b32.xlu1 %v28_v4, %s97_s10  ;;  %v40_v7 = vld [vmem:[#allocation2] sm:$0x1]  }
  0x10   :  { %v46_v8 = vld [vmem:[#allocation2] sm:$0x1]  }
  0x12   :  { %35 = vrot.lane.b32.xlu0 %v34_v6, %s98_s11 }
  0x13   :  { %41 = vrot.lane.b32.xlu1 %v40_v7, %s99_s12 }
  0x16   :  { %47 = vrot.lane.b32.xlu0 %v46_v8, %s100_s13 }
  0x7c   :  { %v12_v9 = vpop.permute.xlu0 %11  }
  0x7d   :  { %v24_v10 = vpop.permute.xlu1 %23   ;;  %15 = vst.msk [vmem:[#allocation0 + $0x1] sm:$0x1] %vm8_vm0, %v12_v9  }
  0x7e   :  { %27 = vst.msk [vmem:[#allocation0 + $0x3] sm:$0x1] %vm8_vm0, %v24_v10  }
  0x80   :  { %v18_v11 = vpop.permute.xlu0 %17  }
  0x81   :  { %v30_v12 = vpop.permute.xlu1 %29   ;;  %21 = vst.msk [vmem:[#allocation0 + $0x2] sm:$0x1] %vm8_vm0, %v18_v11  }
  0x82   :  { %33 = vst.msk [vmem:[#allocation0 + $0x4] sm:$0x1] %vm8_vm0, %v30_v12  }
  0x84   :  { %v36_v13 = vpop.permute.xlu0 %35  }
  0x85   :  { %v42_v14 = vpop.permute.xlu1 %41   ;;  %39 = vst.msk [vmem:[#allocation0 + $0x5] sm:$0x1] %vm8_vm0, %v36_v13  }
  0x86   :  { %45 = vst.msk [vmem:[#allocation0 + $0x6] sm:$0x1] %vm8_vm0, %v42_v14  }
  0x88   :  { %v48_v15 = vpop.permute.xlu0 %47  }
  0x89   :  { %51 = vst.msk [vmem:[#allocation0 + $0x7] sm:$0x1] %vm8_vm0, %v48_v15  }
  0x8a   :  { %81 = shalt.err (!%p78_p4)
}
  0x8b   :  { %s82_s19 = scalar_lea.hbm %s136_s1, 128 }
  0x8c   :  { %p83_p5 = scmp.ne.s32.totalorder %s136_s1, %s82_s19  ;;  %p86_p6 = scmp.lt.u32.totalorder %s82_s19, %s136_s1 }
  0x8e   :  { %p88_p7 = pnand %p86_p6, %p83_p5 }
  0x90   :  { %91 = shalt.err (!%p88_p7)
}
  0x91   :  { %59 = dma.vmem_to_hbm [thread:$0]  %s57_s15, 128, %s136_s1, [#allocation1]  }
  0x92   :  { %92 = dma.done.wait [#allocation1], 128  }
  0x93   :  { %93 = vsyncadd [#allocation1], 4294967168 }
  0x94   :  { %61 = vsyncpa [#allocation1], 1 }

// kernel: cond_mlp_decoder_forward.1
= control target key start
LH: loop header
LB: loop body
LE: loop exit
PB: predicated region body
PF: predicated region fallthrough
CT: control target
= control target key end

     0   :  { %vm56_vm0 = vcmask 359424   ;;  %vm105_vm1 = vcmask 1043456   ;;  %vm1505_vm2 = vmmov 1   ;;  %v1506_v19 = vmov 0.0|0.0   ;;  %s2117_s0 = inlined_call_operand.vmem [shape: f32[44,128], index: 0, kind: input, shape index: {}]   ;;  %s2118_s1 = inlined_call_operand.vmem [shape: f32[128,44], index: 1, kind: input, shape index: {}]   ;;  %s2119_s3 = inlined_call_operand.vmem [shape: f32[5,1], index: 3, kind: input, shape index: {}]   ;;  %s2120_s6 = inlined_call_operand.vmem [shape: f32[64,1], index: 6, kind: input, shape index: {}]   ;;  %s2121_s7 = inlined_call_operand.vmem [shape: f32[64,1], index: 7, kind: input, shape index: {}]   ;;  %s2122_s2 = inlined_call_operand.vmem [shape: f32[5,64], index: 2, kind: input, shape index: {}]   ;;  %s2123_s4 = inlined_call_operand.vmem [shape: f32[64,5], index: 4, kind: input, shape index: {}]   ;;  %s2124_s5 = inlined_call_operand.vmem [shape: f32[64,64], index: 5, kind: input, shape index: {}]   ;;  %s2125_s8 = inlined_call_operand.<no memory space> [shape: f32[1,1], index: 8, kind: input, shape index: {}]   ;;  %s2126_s9 = inlined_call_operand.vmem [shape: f32[1,128], index: 9, kind: output, shape index: {}]  }
   0x1   :  { %v34_v0 = vld [vmem:[%s2117_s0] sm:$0xff]  ;;  %v35_v1 = vld [vmem:[%s2117_s0 + $0x8] sm:$0xff]  ;;  %v36_v2 = vld [vmem:[%s2117_s0 + $0x10] sm:$0xff]  ;;  %vm1507_vm4 = vmmov 0   ;;  %v1508_v26 = vmov 0.0   ;;  %v1509_v27 = vmov 0  }
   0x2   :  { %v1344_v3 = vpack.c.bf16 %v35_v1, %v34_v0  ;;  %v37_v4 = vld [vmem:[%s2117_s0 + $0x18] sm:$0xff]  ;;  %v38_v6 = vld [vmem:[%s2117_s0 + $0x20] sm:$0xff]  ;;  %v39_v7 = vld [vmem:[%s2117_s0 + $0x28] sm:$0xf]  ;;  %1399 = vset.pattern.permute.xlu0 %v1509_v27  ;;  %1400 = vset.pattern.permute.xlu1 %v1509_v27 }
   0x3   :  { %v1348_v5 = vpack.c.bf16 %v37_v4, %v36_v2  ;;  %v40_v8 = vld [vmem:[%s2118_s1] sm:$0xff]  ;;  %v1352_v9 = vpack.c.bf16 %v39_v7, %v38_v6  ;;  %vm1353_vm3 = vmpackc.low %vm105_vm1, %vm1505_vm2  ;;  %v41_v10 = vld [vmem:[%s2118_s1 + $0x8] sm:$0xff] }
   0x4   :  { %1345 = vmatprep.subr.bf16.mxu0 %v1344_v3  ;;  %1259 = vmatprep.mubr.msk.f32.mxu0 %vm56_vm0, %v40_v8  ;;  %v42_v11 = vld [vmem:[%s2118_s1 + $0x10] sm:$0xff]  ;;  %v43_v12 = vld [vmem:[%s2118_s1 + $0x18] sm:$0xff]  ;;  %v44_v13 = vld [vmem:[%s2118_s1 + $0x20] sm:$0xff] }
   0x5   :  { %1347 = vmatpush3.bf16.msra.mxu0 %v1344_v3  ;;  %v45_v14 = vld [vmem:[%s2118_s1 + $0x28] sm:$0xff]  ;;  %v46_v15 = vld [vmem:[%s2118_s1 + $0x30] sm:$0xff]  ;;  %v47_v16 = vld [vmem:[%s2118_s1 + $0x38] sm:$0xff] }
   0x6   :  { %1349 = vmatprep.subr.bf16.mxu0 %v1348_v5  ;;  %v48_v17 = vld [vmem:[%s2118_s1 + $0x40] sm:$0xff]  ;;  %v49_v18 = vld [vmem:[%s2118_s1 + $0x48] sm:$0xff]  ;;  %v50_v20 = vld [vmem:[%s2118_s1 + $0x50] sm:$0xff] }
   0x7   :  { %v51_v21 = vld [vmem:[%s2118_s1 + $0x58] sm:$0xff]  ;;  %v52_v22 = vld [vmem:[%s2118_s1 + $0x60] sm:$0xff]  ;;  %v53_v23 = vld [vmem:[%s2118_s1 + $0x68] sm:$0xff] }
   0x8   :  { %v54_v24 = vld [vmem:[%s2118_s1 + $0x70] sm:$0xff]  ;;  %v55_v25 = vld [vmem:[%s2118_s1 + $0x78] sm:$0xff]  ;;  %v384_v28 = vld [vmem:[%s2119_s3] sm:$0x1f] }
   0x9   :  { %1351 = vmatpush3.bf16.msra.mxu0 %v1348_v5  ;;  %387 = vperm.xlu0 %1399, %v384_v28   ;;  %v758_v29 = vld [vmem:[%s2120_s6] sm:$0xff]  ;;  %v761_v30 = vld [vmem:[%s2120_s6 + $0x18] sm:$0xff]  ;;  %v763_v31 = vld [vmem:[%s2120_s6 + $0x28] sm:$0xff] }
   0xa   :  { %1354 = vmatprep.subr.msk.bf16.mxu0 %vm1353_vm3, %v1352_v9  ;;  %v765_v32 = vld [vmem:[%s2120_s6 + $0x38] sm:$0xff]  ;;  %v1064_v33 = vld [vmem:[%s2121_s7 + $0x8] sm:$0xff] }
   0xb   :  { %v1066_v34 = vld [vmem:[%s2121_s7 + $0x18] sm:$0xff]  ;;  %v1068_v35 = vld [vmem:[%s2121_s7 + $0x28] sm:$0xff] }
   0xc   :  { %v1070_v36 = vld [vmem:[%s2121_s7 + $0x38] sm:$0xff] }
   0xd   :  { %1357 = vmatpush3.bf16.msk.msra.mxu0 %vm1353_vm3, %v1352_v9  ;;  %768 = vperm.xlu0 %1399, %v758_v29  }
   0xe   :  { %1358 = vmatprep.subr.bf16.mxu0 %v1506_v19 }
  0x10   :  { %1260 = vmatmul.mubr.msk.f32.vlgmr.msra.gmra.mrb[0].mxu0 %vm56_vm0, %v41_v10 }
  0x11   :  { %1262 = vmatprep.mubr.msk.f32.mxu0 %vm56_vm0, %v42_v11  ;;  %783 = vperm.xlu0 %1399, %v761_v30  }
  0x14   :  { %1263 = vmatmul.mubr.msk.f32.gmra.mrb[2].mxu0 %vm56_vm0, %v43_v12 }
  0x15   :  { %1265 = vmatprep.mubr.msk.f32.mxu0 %vm56_vm0, %v44_v13  ;;  %793 = vperm.xlu0 %1399, %v763_v31  }
  0x18   :  { %1266 = vmatmul.mubr.msk.f32.gmra.mrb[4].mxu0 %vm56_vm0, %v45_v14 }
  0x19   :  { %1268 = vmatprep.mubr.msk.f32.mxu0 %vm56_vm0, %v46_v15  ;;  %803 = vperm.xlu0 %1399, %v765_v32  }
  0x1c   :  { %1269 = vmatmul.mubr.msk.f32.gmra.mrb[6].mxu0 %vm56_vm0, %v47_v16 }
  0x1d   :  { %1271 = vmatprep.mubr.msk.f32.mxu0 %vm56_vm0, %v48_v17  ;;  %1079 = vperm.xlu0 %1399, %v1064_v33  }
  0x20   :  { %1272 = vmatmul.mubr.msk.f32.gmra.mrb[8].mxu0 %vm56_vm0, %v49_v18 }
  0x21   :  { %1274 = vmatprep.mubr.msk.f32.mxu0 %vm56_vm0, %v50_v20  ;;  %1089 = vperm.xlu0 %1399, %v1066_v34  }
  0x24   :  { %1275 = vmatmul.mubr.msk.f32.gmra.mrb[10].mxu0 %vm56_vm0, %v51_v21 }
  0x25   :  { %1277 = vmatprep.mubr.msk.f32.mxu0 %vm56_vm0, %v52_v22  ;;  %1099 = vperm.xlu0 %1399, %v1068_v35  }
  0x28   :  { %1278 = vmatmul.mubr.msk.f32.gmra.mrb[12].mxu0 %vm56_vm0, %v53_v23 }
  0x29   :  { %1280 = vmatprep.mubr.msk.f32.mxu0 %vm56_vm0, %v54_v24  ;;  %1109 = vperm.xlu0 %1399, %v1070_v36  }
  0x2c   :  { %1281 = vmatmul.mubr.msk.f32.gmra.mrb[14].mxu0 %vm56_vm0, %v55_v25 }
  0x2d   :  { %1299 = vmatprep.mubr.msk.f32.mxu0 %vm1507_vm4, %v1508_v26 }
  0xe3   :  { %v1670_v37 = vpop.f32.mrb[0].mxu0 }
  0xe4   :  { %v1673_v38 = vmul.f32 100.0, %v1670_v37  ;;  %v1675_v39 = vpop.f32.mrb[1].mxu0 }
  0xe5   :  { %v1678_v40 = vmul.f32 100.0, %v1675_v39 }
  0xe6   :  { %v271_v41 = vmin.f32 %v1673_v38, 20.0  ;;  %vm263_vm5 = vcmp.gt.f32.partialorder %v1673_v38, 20.0 }
  0xe7   :  { %v270_v42 = vmin.f32 %v1678_v40, 20.0  ;;  %v1682_v43 = vpop.f32.mrb[2].mxu0  ;;  %vm262_vm7 = vcmp.gt.f32.partialorder %v1678_v40, 20.0 }
  0xe8   :  { %v280_v44 = vmul.f32 1.442695, %v271_v41  ;;  %v1685_v45 = vmul.f32 100.0, %v1682_v43  ;;  %v1687_v46 = vpop.f32.mrb[3].mxu0 }
  0xe9   :  { %v278_v47 = vmul.f32 1.442695, %v270_v42  ;;  %v1690_v48 = vmul.f32 100.0, %v1687_v46 }
  0xea   :  { %1401 = vpow2.f32 %v280_v44  ;;  %v273_v49 = vmin.f32 %v1685_v45, 20.0  ;;  %vm265_vm11 = vcmp.gt.f32.partialorder %v1685_v45, 20.0 }
  0xeb   :  { %1403 = vpow2.f32 %v278_v47  ;;  %v272_v50 = vmin.f32 %v1690_v48, 20.0  ;;  %v1694_v51 = vpop.f32.mrb[4].mxu0  ;;  %vm264_vm12 = vcmp.gt.f32.partialorder %v1690_v48, 20.0 }
  0xec   :  { %v284_v52 = vmul.f32 1.442695, %v273_v49  ;;  %v1697_v53 = vmul.f32 100.0, %v1694_v51  ;;  %v1699_v54 = vpop.f32.mrb[5].mxu0 }
  0xed   :  { %v282_v55 = vmul.f32 1.442695, %v272_v50  ;;  %v1702_v56 = vmul.f32 100.0, %v1699_v54 }
  0xee   :  { %1405 = vpow2.f32 %v284_v52  ;;  %v275_v57 = vmin.f32 %v1697_v53, 20.0  ;;  %vm267_vm15 = vcmp.gt.f32.partialorder %v1697_v53, 20.0 }
  0xef   :  { %1407 = vpow2.f32 %v282_v55  ;;  %v274_v58 = vmin.f32 %v1702_v56, 20.0  ;;  %v1706_v59 = vpop.f32.mrb[6].mxu0  ;;  %vm266_vm0 = vcmp.gt.f32.partialorder %v1702_v56, 20.0 }
  0xf0   :  { %v288_v60 = vmul.f32 1.442695, %v275_v57  ;;  %v1709_v61 = vmul.f32 100.0, %v1706_v59  ;;  %v1711_v62 = vpop.f32.mrb[7].mxu0 }
  0xf1   :  { %v286_v63 = vmul.f32 1.442695, %v274_v58  ;;  %v1715_v6 = vmul.f32 100.0, %v1711_v62 }
  0xf2   :  { %1409 = vpow2.f32 %v288_v60  ;;  %v277_v0 = vmin.f32 %v1709_v61, 20.0  ;;  %vm269_vm3 = vcmp.gt.f32.partialorder %v1709_v61, 20.0 }
  0xf3   :  { %1411 = vpow2.f32 %v286_v63  ;;  %v276_v12 = vmin.f32 %v1715_v6, 20.0  ;;  %vm268_vm4 = vcmp.gt.f32.partialorder %v1715_v6, 20.0  ;;  %v1775_v49 = vpop.f32.mrb[8].mxu0 }
  0xf4   :  { %v1402_v1 = vpop.eup %1401  ;;  %v292_v2 = vmul.f32 1.442695, %v277_v0  ;;  %v1777_v61 = vpop.f32.mrb[9].mxu0 }
  0xf5   :  { %v1404_v3 = vpop.eup %1403  ;;  %v303_v4 = vadd.f32 1.0, %v1402_v1  ;;  %v306_v9 = vmul.f32 -0.5, %v1402_v1  ;;  %v309_v17 = vand.u32 2147483647, %v1402_v1  ;;  %v290_v22 = vmul.f32 1.442695, %v276_v12 }
  0xf6   :  { %v294_v5 = vadd.f32 1.0, %v1404_v3  ;;  %1413 = vpow2.f32 %v292_v2  ;;  %v297_v13 = vmul.f32 -0.5, %v1404_v3  ;;  %v300_v26 = vand.u32 2147483647, %v1404_v3 }
  0xf7   :  { %1415 = vlog2.f32 %v303_v4  ;;  %v307_v16 = vadd.f32 1.0, %v306_v9  ;;  %vm1727_vm6 = vcmp.lt.f32.partialorder %v309_v17, 0.0004427343 }
  0xf8   :  { %v1406_v7 = vpop.eup %1405  ;;  %1417 = vlog2.f32 %v294_v5  ;;  %v298_v23 = vadd.f32 1.0, %v297_v13  ;;  %vm301_vm8 = vcmp.lt.f32.partialorder %v300_v26, 0.0004427343 }
  0xf9   :  { %v1408_v8 = vpop.eup %1407  ;;  %v321_v10 = vadd.f32 1.0, %v1406_v7  ;;  %v324_v20 = vmul.f32 -0.5, %v1406_v7  ;;  %v327_v27 = vand.u32 2147483647, %v1406_v7  ;;  %v308_v29 = vmul.f32 %v1402_v1, %v307_v16 }
  0xfa   :  { %v312_v11 = vadd.f32 1.0, %v1408_v8  ;;  %v315_v24 = vmul.f32 -0.5, %v1408_v8  ;;  %v299_v41 = vmul.f32 %v1404_v3, %v298_v23  ;;  %v318_v50 = vand.u32 2147483647, %v1408_v8 }
  0xfb   :  { %1419 = vlog2.f32 %v321_v10  ;;  %v325_v34 = vadd.f32 1.0, %v324_v20  ;;  %vm1737_vm9 = vcmp.lt.f32.partialorder %v327_v27, 0.0004427343 }
  0xfc   :  { %v1718_v14 = vpop.eup %1409  ;;  %1421 = vlog2.f32 %v312_v11  ;;  %v316_v42 = vadd.f32 1.0, %v315_v24  ;;  %vm319_vm10 = vcmp.lt.f32.partialorder %v318_v50, 0.0004427343  ;;  %v1779_v50 = vpop.f32.mrb[10].mxu0 }
  0xfd   :  { %v1720_v15 = vpop.eup %1411  ;;  %v339_v18 = vadd.f32 1.0, %v1718_v14  ;;  %v342_v35 = vmul.f32 -0.5, %v1718_v14  ;;  %v345_v58 = vand.u32 2147483647, %v1718_v14  ;;  %v326_v1 = vmul.f32 %v1406_v7, %v325_v34 }
  0xfe   :  { %v330_v21 = vadd.f32 1.0, %v1720_v15  ;;  %v333_v44 = vmul.f32 -0.5, %v1720_v15  ;;  %v317_v5 = vmul.f32 %v1408_v8, %v316_v42  ;;  %v336_v12 = vand.u32 2147483647, %v1720_v15 }
  0xff   :  { %1423 = vlog2.f32 %v339_v18  ;;  %v343_v2 = vadd.f32 1.0, %v342_v35  ;;  %vm346_vm13 = vcmp.lt.f32.partialorder %v345_v58, 0.0004427343  ;;  %v388_v58 = vpop.permute.xlu0 %387 }
 0x100   :  { %v1724_v25 = vpop.eup %1413  ;;  %1425 = vlog2.f32 %v330_v21  ;;  %v334_v9 = vadd.f32 1.0, %v333_v44  ;;  %vm337_vm14 = vcmp.lt.f32.partialorder %v336_v12, 0.0004427343 }
 0x101   :  { %v1416_v28 = vpop.eup %1415  ;;  %v357_v31 = vadd.f32 1.0, %v1724_v25  ;;  %1427 = vpow2.f32 %v290_v22  ;;  %v344_v40 = vmul.f32 %v1718_v14, %v343_v2  ;;  %v360_v23 = vmul.f32 -0.5, %v1724_v25 }
 0x102   :  { %v1418_v32 = vpop.eup %1417  ;;  %v305_v33 = vmul.f32 0.6931472, %v1416_v28  ;;  %v335_v20 = vmul.f32 %v1720_v15, %v334_v9  ;;  %v363_v30 = vand.u32 2147483647, %v1724_v25 }
 0x103   :  { %v296_v36 = vmul.f32 0.6931472, %v1418_v32  ;;  %1429 = vlog2.f32 %v357_v31  ;;  %v361_v28 = vadd.f32 1.0, %v360_v23  ;;  %v14_v23 = vstv %s2125_s8 }
 0x104   :  { %v311_v47 = vsel %vm1727_vm6, %v308_v29, %v305_v33  ;;  %vm364_vm1 = vcmp.lt.f32.partialorder %v363_v30, 0.0004427343  ;;  %vm488_vm6 = vcmask 39936   ;;  %15 = vst [vmem:[#allocation2] sm:$0x1] %v14_v23 }
 0x105   :  { %v1420_v52 = vpop.eup %1419  ;;  %v368_v55 = vmul.f32 0.01, %v311_v47  ;;  %v302_v57 = vsel %vm301_vm8, %v299_v41, %v296_v36  ;;  %v362_v53 = vmul.f32 %v1724_v25, %v361_v28  ;;  %v383_v47 = vld [vmem:[%s2122_s2] sm:$0x1f]  ;;  %vm513_vm8 = vcmask 1044480  }
 0x106   :  { %v1422_v60 = vpop.eup %1421  ;;  %v367_v63 = vmul.f32 0.01, %v302_v57  ;;  %v323_v0 = vmul.f32 0.6931472, %v1420_v52  ;;  %v480_v57 = vld [vmem:[%s2123_s4] sm:$0xff] }
 0x107   :  { %v376_v3 = vsel %vm263_vm5, %v1670_v37, %v368_v55  ;;  %v314_v4 = vmul.f32 0.6931472, %v1422_v60  ;;  %vm390_vm5 = vcmask 523264   ;;  %1304 = vmatprep.mubr.msk.f32.mxu1 %vm488_vm6, %v480_v57 }
 0x108   :  { %v375_v10 = vsel %vm262_vm7, %v1675_v39, %v367_v63  ;;  %v329_v11 = vsel %vm1737_vm9, %v326_v1, %v323_v0 }
 0x109   :  { %v1424_v13 = vpop.eup %1423  ;;  %v1359_v7 = vpack.c.bf16 %v376_v3, %v375_v10  ;;  %v370_v16 = vmul.f32 0.01, %v329_v11  ;;  %v320_v38 = vsel %vm319_vm10, %v317_v5, %v314_v4 }
 0x10a   :  { %v1426_v37 = vpop.eup %1425  ;;  %v369_v8 = vmul.f32 0.01, %v320_v38  ;;  %v341_v17 = vmul.f32 0.6931472, %v1424_v13 }
 0x10b   :  { %v378_v39 = vsel %vm265_vm11, %v1682_v43, %v370_v16  ;;  %v332_v18 = vmul.f32 0.6931472, %v1426_v37  ;;  %1360 = vmatpush3.bf16.msra.mxu0 %v1359_v7  ;;  %v1428_v21 = vpop.eup %1427 }
 0x10c   :  { %v377_v22 = vsel %vm264_vm12, %v1687_v46, %v369_v8  ;;  %v347_v45 = vsel %vm346_vm13, %v344_v40, %v341_v17  ;;  %1361 = vmatprep.subr.bf16.mxu0 %v1506_v19  ;;  %v348_v14 = vadd.f32 1.0, %v1428_v21  ;;  %v351_v32 = vmul.f32 -0.5, %v1428_v21  ;;  %v481_v8 = vld [vmem:[%s2123_s4 + $0x8] sm:$0xff]  ;;  %v482_v17 = vld [vmem:[%s2123_s4 + $0x10] sm:$0xff]  ;;  %v483_v40 = vld [vmem:[%s2123_s4 + $0x18] sm:$0xff] }
 0x10d   :  { %v1362_v48 = vpack.c.bf16 %v378_v39, %v377_v22  ;;  %v372_v24 = vmul.f32 0.01, %v347_v45  ;;  %v338_v26 = vsel %vm337_vm14, %v335_v20, %v332_v18  ;;  %v1430_v27 = vpop.eup %1429  ;;  %v354_v33 = vand.u32 2147483647, %v1428_v21  ;;  %v484_v39 = vld [vmem:[%s2123_s4 + $0x20] sm:$0xff]  ;;  %v485_v18 = vld [vmem:[%s2123_s4 + $0x28] sm:$0xff] }
 0x10e   :  { %v371_v43 = vmul.f32 0.01, %v338_v26  ;;  %1431 = vlog2.f32 %v348_v14  ;;  %v359_v31 = vmul.f32 0.6931472, %v1430_v27  ;;  %v352_v56 = vadd.f32 1.0, %v351_v32  ;;  %v486_v20 = vld [vmem:[%s2123_s4 + $0x30] sm:$0xff] }
 0x10f   :  { %v380_v15 = vsel %vm267_vm15, %v1694_v51, %v372_v24  ;;  %1363 = vmatpush3.bf16.msra.mxu0 %v1362_v48  ;;  %vm355_vm2 = vcmp.lt.f32.partialorder %v354_v33, 0.0004427343  ;;  %v750_v22 = vld [vmem:[%s2124_s5] sm:$0xff]  ;;  %v759_v45 = vld [vmem:[%s2120_s6 + $0x8] sm:$0xff]  ;;  %v760_v48 = vld [vmem:[%s2120_s6 + $0x10] sm:$0xff] }
 0x110   :  { %v379_v46 = vsel %vm266_vm0, %v1699_v54, %v371_v43  ;;  %1364 = vmatprep.subr.bf16.mxu0 %v1506_v19  ;;  %v365_v51 = vsel %vm364_vm1, %v362_v53, %v359_v31  ;;  %v353_v36 = vmul.f32 %v1428_v21, %v352_v56  ;;  %v487_v21 = vld [vmem:[%s2123_s4 + $0x38] sm:$0xff]  ;;  %773 = vperm.xlu1 %1400, %v759_v45   ;;  %v762_v24 = vld [vmem:[%s2120_s6 + $0x20] sm:$0xff]  ;;  %v764_v26 = vld [vmem:[%s2120_s6 + $0x30] sm:$0xff] }
 0x111   :  { %v1365_v29 = vpack.c.bf16 %v380_v15, %v379_v46  ;;  %v374_v35 = vmul.f32 0.01, %v365_v51  ;;  %v1063_v14 = vld [vmem:[%s2121_s7] sm:$0xff]  ;;  %v1065_v43 = vld [vmem:[%s2121_s7 + $0x10] sm:$0xff] }
 0x112   :  { %v1067_v27 = vld [vmem:[%s2121_s7 + $0x20] sm:$0xff]  ;;  %v1069_v15 = vld [vmem:[%s2121_s7 + $0x30] sm:$0xff] }
 0x113   :  { %1366 = vmatpush3.bf16.msra.mxu0 %v1365_v29  ;;  %v382_v42 = vsel %vm269_vm3, %v1706_v59, %v374_v35  ;;  %v1781_v59 = vpop.f32.mrb[11].mxu0  ;;  %v1071_v46 = vld [vmem:[#allocation2] sm:$0x1] }
 0x114   :  { %1367 = vmatprep.subr.bf16.mxu0 %v1506_v19  ;;  %v1783_v6 = vpop.f32.mrb[12].mxu0  ;;  %778 = vperm.xlu1 %1400, %v760_v48  }
 0x118   :  { %v1432_v34 = vpop.eup %1431  ;;  %788 = vperm.xlu1 %1400, %v762_v24  }
 0x119   :  { %v350_v54 = vmul.f32 0.6931472, %v1432_v34 }
 0x11b   :  { %v356_v41 = vsel %vm355_vm2, %v353_v36, %v350_v54 }
 0x11c   :  { %v373_v44 = vmul.f32 0.01, %v356_v41  ;;  %798 = vperm.xlu1 %1400, %v764_v26  }
 0x11e   :  { %v381_v25 = vsel %vm268_vm4, %v1711_v62, %v373_v44  ;;  %v1785_v62 = vpop.f32.mrb[13].mxu0 }
 0x11f   :  { %v1368_v19 = vpack.c.bf16 %v382_v42, %v381_v25  ;;  %v1787_v52 = vpop.f32.mrb[14].mxu0 }
 0x120   :  { %v1789_v55 = vpop.f32.mrb[15].mxu0  ;;  %1074 = vperm.xlu1 %1400, %v1063_v14  }
 0x121   :  { %1369 = vmatpush3.bf16.msra.mxu0 %v1368_v19 }
 0x124   :  { %1300 = vmatmul.mubr.msk.f32.vlgmr.msra.gmra.mrb[16].mxu0 %vm390_vm5, %v383_v47  ;;  %1084 = vperm.xlu1 %1400, %v1065_v43  }
 0x128   :  { %1094 = vperm.xlu1 %1400, %v1067_v27  }
 0x12c   :  { %1104 = vperm.xlu1 %1400, %v1069_v15  }
 0x130   :  { %1135 = vperm.xlu1 %1400, %v1071_v46  }
 0x1f7   :  { %v460_v60 = vpop.f32.mrb[16].mxu0 }
 0x1f8   :  { %v461_v63 = vadd.f32 %v460_v60, %v388_v58  ;;  %v1301_v0 = vpop.f32.mrb[17].mxu0 }
 0x1fa   :  { %v464_v1 = vmul.f32 100.0, %v461_v63 }
 0x1fc   :  { %v466_v2 = vmin.f32 %v464_v1, 20.0  ;;  %vm465_vm9 = vcmp.gt.f32.partialorder %v464_v1, 20.0 }
 0x1fe   :  { %v467_v3 = vmul.f32 1.442695, %v466_v2 }
 0x200   :  { %1433 = vpow2.f32 %v467_v3 }
 0x20a   :  { %v1434_v4 = vpop.eup %1433 }
 0x20b   :  { %v469_v5 = vadd.f32 1.0, %v1434_v4  ;;  %v472_v9 = vmul.f32 -0.5, %v1434_v4  ;;  %v475_v11 = vand.u32 2147483647, %v1434_v4 }
 0x20d   :  { %1435 = vlog2.f32 %v469_v5  ;;  %v473_v10 = vadd.f32 1.0, %v472_v9  ;;  %vm476_vm7 = vcmp.lt.f32.partialorder %v475_v11, 0.0004427343 }
 0x20f   :  { %v474_v7 = vmul.f32 %v1434_v4, %v473_v10 }
 0x217   :  { %v1436_v12 = vpop.eup %1435 }
 0x218   :  { %v471_v13 = vmul.f32 0.6931472, %v1436_v12 }
 0x21a   :  { %v477_v16 = vsel %vm476_vm7, %v474_v7, %v471_v13 }
 0x21b   :  { %v478_v38 = vmul.f32 0.01, %v477_v16 }
 0x21d   :  { %v479_v37 = vsel %vm465_vm9, %v461_v63, %v478_v38 }
 0x21e   :  { %1302 = vmatprep.subr.msk.mxu1 %vm513_vm8, %v479_v37 }
 0x21f   :  { %1303 = vmatpush3.msk.msra.mxu1 %vm513_vm8, %v479_v37 }
 0x220   :  { %1305 = vmatmul.mubr.msk.f32.vlgmr.msra.gmra.mrb[0].mxu1 %vm488_vm6, %v481_v8 }
 0x221   :  { %1307 = vmatprep.mubr.msk.f32.mxu1 %vm488_vm6, %v482_v17 }
 0x224   :  { %1308 = vmatmul.mubr.msk.f32.gmra.mrb[2].mxu1 %vm488_vm6, %v483_v40 }
 0x225   :  { %1310 = vmatprep.mubr.msk.f32.mxu1 %vm488_vm6, %v484_v39 }
 0x228   :  { %1311 = vmatmul.mubr.msk.f32.gmra.mrb[4].mxu1 %vm488_vm6, %v485_v18 }
 0x229   :  { %1313 = vmatprep.mubr.msk.f32.mxu1 %vm488_vm6, %v486_v20 }
 0x22c   :  { %1314 = vmatmul.mubr.msk.f32.gmra.mrb[6].mxu1 %vm488_vm6, %v487_v21 }
 0x22d   :  { %1332 = vmatprep.mubr.msk.f32.mxu1 %vm390_vm5, %v750_v22 }
 0x2f3   :  { %v1306_v28 = vpop.f32.mrb[0].mxu1 }
 0x2f4   :  { %v1855_v29 = vadd.f32 %v1306_v28, %v1775_v49  ;;  %v583_v30 = vpop.f32.mrb[1].mxu1 }
 0x2f5   :  { %v1858_v31 = vadd.f32 %v583_v30, %v1777_v61 }
 0x2f6   :  { %v1861_v32 = vmul.f32 100.0, %v1855_v29 }
 0x2f7   :  { %v1864_v53 = vmul.f32 100.0, %v1858_v31  ;;  %v1309_v51 = vpop.f32.mrb[2].mxu1 }
 0x2f8   :  { %v639_v56 = vmin.f32 %v1861_v32, 20.0  ;;  %v1868_v33 = vadd.f32 %v1309_v51, %v1779_v50  ;;  %v593_v34 = vpop.f32.mrb[3].mxu1  ;;  %vm631_vm10 = vcmp.gt.f32.partialorder %v1861_v32, 20.0 }
 0x2f9   :  { %v638_v35 = vmin.f32 %v1864_v53, 20.0  ;;  %v1872_v54 = vadd.f32 %v593_v34, %v1781_v59  ;;  %vm630_vm11 = vcmp.gt.f32.partialorder %v1864_v53, 20.0 }
 0x2fa   :  { %v648_v36 = vmul.f32 1.442695, %v639_v56  ;;  %v1875_v41 = vmul.f32 100.0, %v1868_v33 }
 0x2fb   :  { %v646_v42 = vmul.f32 1.442695, %v638_v35  ;;  %v1878_v44 = vmul.f32 100.0, %v1872_v54  ;;  %v1312_v25 = vpop.f32.mrb[4].mxu1 }
 0x2fc   :  { %1437 = vpow2.f32 %v648_v36  ;;  %v641_v19 = vmin.f32 %v1875_v41, 20.0  ;;  %v1882_v47 = vadd.f32 %v1312_v25, %v1783_v6  ;;  %v603_v49 = vpop.f32.mrb[5].mxu1  ;;  %vm633_vm14 = vcmp.gt.f32.partialorder %v1875_v41, 20.0 }
 0x2fd   :  { %1439 = vpow2.f32 %v646_v42  ;;  %v640_v61 = vmin.f32 %v1878_v44, 20.0  ;;  %v1886_v50 = vadd.f32 %v603_v49, %v1785_v62  ;;  %vm632_vm15 = vcmp.gt.f32.partialorder %v1878_v44, 20.0 }
 0x2fe   :  { %v652_v59 = vmul.f32 1.442695, %v641_v19  ;;  %v1889_v57 = vmul.f32 100.0, %v1882_v47 }
 0x2ff   :  { %v650_v58 = vmul.f32 1.442695, %v640_v61  ;;  %v1892_v60 = vmul.f32 100.0, %v1886_v50  ;;  %v1315_v63 = vpop.f32.mrb[6].mxu1 }
 0x300   :  { %1441 = vpow2.f32 %v652_v59  ;;  %v643_v6 = vmin.f32 %v1889_v57, 20.0  ;;  %v1896_v0 = vadd.f32 %v1315_v63, %v1787_v52  ;;  %v613_v1 = vpop.f32.mrb[7].mxu1  ;;  %vm635_vm4 = vcmp.gt.f32.partialorder %v1889_v57, 20.0 }
 0x301   :  { %1443 = vpow2.f32 %v650_v58  ;;  %v642_v62 = vmin.f32 %v1892_v60, 20.0  ;;  %v1900_v2 = vadd.f32 %v613_v1, %v1789_v55  ;;  %vm634_vm6 = vcmp.gt.f32.partialorder %v1892_v60, 20.0 }
 0x302   :  { %v656_v3 = vmul.f32 1.442695, %v643_v6  ;;  %v1903_v4 = vmul.f32 100.0, %v1896_v0 }
 0x303   :  { %v654_v5 = vmul.f32 1.442695, %v642_v62  ;;  %v1906_v9 = vmul.f32 100.0, %v1900_v2 }
 0x304   :  { %1445 = vpow2.f32 %v656_v3  ;;  %v645_v10 = vmin.f32 %v1903_v4, 20.0  ;;  %vm637_vm9 = vcmp.gt.f32.partialorder %v1903_v4, 20.0  ;;  %v752_v4 = vld [vmem:[%s2124_s5 + $0x10] sm:$0xff] }
 0x305   :  { %1447 = vpow2.f32 %v654_v5  ;;  %v644_v52 = vmin.f32 %v1906_v9, 20.0 }
 0x306   :  { %v1438_v11 = vpop.eup %1437  ;;  %v660_v12 = vmul.f32 1.442695, %v645_v10 }
 0x307   :  { %v1440_v13 = vpop.eup %1439  ;;  %v658_v7 = vmul.f32 1.442695, %v644_v52  ;;  %v671_v55 = vadd.f32 1.0, %v1438_v11  ;;  %v674_v40 = vmul.f32 -0.5, %v1438_v11  ;;  %v677_v21 = vand.u32 2147483647, %v1438_v11 }
 0x308   :  { %1449 = vpow2.f32 %v660_v12  ;;  %v662_v16 = vadd.f32 1.0, %v1440_v13  ;;  %v665_v17 = vmul.f32 -0.5, %v1440_v13  ;;  %v668_v45 = vand.u32 2147483647, %v1440_v13 }
 0x309   :  { %1451 = vpow2.f32 %v658_v7  ;;  %v675_v24 = vadd.f32 1.0, %v674_v40  ;;  %vm1917_vm12 = vcmp.lt.f32.partialorder %v677_v21, 0.0004427343 }
 0x30a   :  { %v1442_v38 = vpop.eup %1441  ;;  %1453 = vlog2.f32 %v662_v16  ;;  %v666_v48 = vadd.f32 1.0, %v665_v17  ;;  %vm1923_vm13 = vcmp.lt.f32.partialorder %v668_v45, 0.0004427343 }
 0x30b   :  { %v1444_v37 = vpop.eup %1443  ;;  %1455 = vlog2.f32 %v671_v55  ;;  %v689_v8 = vadd.f32 1.0, %v1442_v38  ;;  %v692_v18 = vmul.f32 -0.5, %v1442_v38  ;;  %v695_v56 = vand.u32 2147483647, %v1442_v38 }
 0x30c   :  { %v680_v39 = vadd.f32 1.0, %v1444_v37  ;;  %v683_v26 = vmul.f32 -0.5, %v1444_v37  ;;  %v686_v43 = vand.u32 2147483647, %v1444_v37  ;;  %v667_v42 = vmul.f32 %v1440_v13, %v666_v48 }
 0x30d   :  { %1457 = vlog2.f32 %v689_v8  ;;  %v693_v27 = vadd.f32 1.0, %v692_v18  ;;  %v676_v25 = vmul.f32 %v1438_v11, %v675_v24  ;;  %vm1938_vm1 = vcmp.lt.f32.partialorder %v695_v56, 0.0004427343 }
 0x30e   :  { %v1446_v20 = vpop.eup %1445  ;;  %1459 = vlog2.f32 %v680_v39  ;;  %v684_v19 = vadd.f32 1.0, %v683_v26  ;;  %vm1932_vm0 = vcmp.lt.f32.partialorder %v686_v43, 0.0004427343 }
 0x30f   :  { %v1910_v22 = vpop.eup %1447  ;;  %v707_v23 = vadd.f32 1.0, %v1446_v20  ;;  %v710_v28 = vmul.f32 -0.5, %v1446_v20  ;;  %v694_v63 = vmul.f32 %v1442_v38, %v693_v27  ;;  %v713_v62 = vand.u32 2147483647, %v1446_v20 }
 0x310   :  { %v698_v14 = vadd.f32 1.0, %v1910_v22  ;;  %v701_v34 = vmul.f32 -0.5, %v1910_v22  ;;  %v704_v11 = vand.u32 2147483647, %v1910_v22  ;;  %v685_v17 = vmul.f32 %v1444_v37, %v684_v19 }
 0x311   :  { %1461 = vlog2.f32 %v707_v23  ;;  %v711_v1 = vadd.f32 1.0, %v710_v28  ;;  %vm1952_vm2 = vcmp.lt.f32.partialorder %v713_v62, 0.0004427343  ;;  %v774_v62 = vpop.permute.xlu1 %773 }
 0x312   :  { %v1913_v15 = vpop.eup %1449  ;;  %1463 = vlog2.f32 %v698_v14  ;;  %v702_v52 = vadd.f32 1.0, %v701_v34  ;;  %vm705_vm3 = vcmp.lt.f32.partialorder %v704_v11, 0.0004427343 }
 0x313   :  { %v1921_v30 = vpop.eup %1451  ;;  %v725_v35 = vadd.f32 1.0, %v1913_v15  ;;  %v728_v16 = vmul.f32 -0.5, %v1913_v15  ;;  %v712_v21 = vmul.f32 %v1446_v20, %v711_v1  ;;  %v731_v32 = vand.u32 2147483647, %v1913_v15  ;;  %v769_v1 = vpop.permute.xlu0 %768 }
 0x314   :  { %v1454_v36 = vpop.eup %1453  ;;  %v716_v49 = vadd.f32 1.0, %v1921_v30  ;;  %v719_v40 = vmul.f32 -0.5, %v1921_v30  ;;  %v703_v53 = vmul.f32 %v1910_v22, %v702_v52  ;;  %v722_v51 = vand.u32 2147483647, %v1921_v30 }
 0x315   :  { %v1456_v61 = vpop.eup %1455  ;;  %v664_v59 = vmul.f32 0.6931472, %v1454_v36  ;;  %1465 = vlog2.f32 %v725_v35  ;;  %v729_v20 = vadd.f32 1.0, %v728_v16  ;;  %vm732_vm7 = vcmp.lt.f32.partialorder %v731_v32, 0.0004427343 }
 0x316   :  { %v673_v6 = vmul.f32 0.6931472, %v1456_v61  ;;  %1467 = vlog2.f32 %v716_v49  ;;  %v720_v28 = vadd.f32 1.0, %v719_v40  ;;  %vm723_vm8 = vcmp.lt.f32.partialorder %v722_v51, 0.0004427343 }
 0x317   :  { %v1458_v3 = vpop.eup %1457  ;;  %v670_v5 = vsel %vm1923_vm13, %v667_v42, %v664_v59 }
 0x318   :  { %v1460_v12 = vpop.eup %1459  ;;  %v679_v13 = vsel %vm1917_vm12, %v676_v25, %v673_v6  ;;  %v734_v7 = vmul.f32 0.01, %v670_v5  ;;  %v691_v55 = vmul.f32 0.6931472, %v1458_v3  ;;  %v721_v19 = vmul.f32 %v1921_v30, %v720_v28  ;;  %v757_v6 = vld [vmem:[%s2124_s5 + $0x38] sm:$0xff]  ;;  %v784_v3 = vpop.permute.xlu0 %783 }
 0x319   :  { %v735_v38 = vmul.f32 0.01, %v679_v13  ;;  %v682_v8 = vmul.f32 0.6931472, %v1460_v12  ;;  %v779_v12 = vpop.permute.xlu1 %778 }
 0x31a   :  { %v742_v39 = vsel %vm630_vm11, %v1858_v31, %v734_v7  ;;  %v697_v18 = vsel %vm1938_vm1, %v694_v63, %v691_v55  ;;  %v756_v63 = vld [vmem:[%s2124_s5 + $0x30] sm:$0xff] }
 0x31b   :  { %v1462_v23 = vpop.eup %1461  ;;  %v743_v48 = vsel %vm631_vm10, %v1855_v29, %v735_v38  ;;  %v688_v37 = vsel %vm1932_vm0, %v685_v17, %v682_v8  ;;  %v737_v24 = vmul.f32 0.01, %v697_v18  ;;  %vm636_vm10 = vcmp.gt.f32.partialorder %v1906_v9, 20.0  ;;  %v755_v9 = vld [vmem:[%s2124_s5 + $0x28] sm:$0xff] }
 0x31c   :  { %v1464_v31 = vpop.eup %1463  ;;  %v1370_v26 = vpack.c.bf16 %v743_v48, %v742_v39  ;;  %v736_v14 = vmul.f32 0.01, %v688_v37  ;;  %v709_v43 = vmul.f32 0.6931472, %v1462_v23  ;;  %v794_v17 = vpop.permute.xlu0 %793 }
 0x31d   :  { %v745_v27 = vsel %vm633_vm14, %v1868_v33, %v737_v24  ;;  %v700_v46 = vmul.f32 0.6931472, %v1464_v31  ;;  %v789_v37 = vpop.permute.xlu1 %788 }
 0x31e   :  { %1371 = vmatprep.subr.bf16.mxu1 %v1370_v26  ;;  %v744_v29 = vsel %vm632_vm15, %v1872_v54, %v736_v14  ;;  %v715_v22 = vsel %vm1952_vm2, %v712_v21, %v709_v43  ;;  %v730_v54 = vmul.f32 %v1913_v15, %v729_v20 }
 0x31f   :  { %v1466_v56 = vpop.eup %1465  ;;  %1373 = vmatpush3.bf16.msra.mxu1 %v1370_v26  ;;  %v1374_v33 = vpack.c.bf16 %v745_v27, %v744_v29  ;;  %v706_v41 = vsel %vm705_vm3, %v703_v53, %v700_v46  ;;  %v739_v34 = vmul.f32 0.01, %v715_v22 }
 0x320   :  { %v1468_v35 = vpop.eup %1467  ;;  %v738_v36 = vmul.f32 0.01, %v706_v41  ;;  %v727_v42 = vmul.f32 0.6931472, %v1466_v56  ;;  %v804_v27 = vpop.permute.xlu0 %803 }
 0x321   :  { %1375 = vmatprep.subr.bf16.mxu1 %v1374_v33  ;;  %v747_v44 = vsel %vm635_vm4, %v1882_v47, %v739_v34  ;;  %v718_v25 = vmul.f32 0.6931472, %v1468_v35  ;;  %v799_v34 = vpop.permute.xlu1 %798 }
 0x322   :  { %v746_v57 = vsel %vm634_vm6, %v1886_v50, %v738_v36  ;;  %v733_v49 = vsel %vm732_vm7, %v730_v54, %v727_v42  ;;  %v751_v50 = vld [vmem:[%s2124_s5 + $0x8] sm:$0xff] }
 0x323   :  { %1377 = vmatpush3.bf16.msra.mxu1 %v1374_v33  ;;  %v1378_v61 = vpack.c.bf16 %v747_v44, %v746_v57  ;;  %v724_v59 = vsel %vm723_vm8, %v721_v19, %v718_v25  ;;  %v741_v58 = vmul.f32 0.01, %v733_v49 }
 0x324   :  { %v740_v60 = vmul.f32 0.01, %v724_v59 }
 0x325   :  { %1379 = vmatprep.subr.bf16.mxu1 %v1378_v61  ;;  %v749_v47 = vsel %vm637_vm9, %v1896_v0, %v741_v58  ;;  %v753_v0 = vld [vmem:[%s2124_s5 + $0x18] sm:$0xff] }
 0x326   :  { %v748_v15 = vsel %vm636_vm10, %v1900_v2, %v740_v60  ;;  %v754_v2 = vld [vmem:[%s2124_s5 + $0x20] sm:$0xff] }
 0x327   :  { %1381 = vmatpush3.bf16.msra.mxu1 %v1378_v61  ;;  %v1382_v30 = vpack.c.bf16 %v749_v47, %v748_v15 }
 0x329   :  { %1383 = vmatprep.subr.bf16.mxu1 %v1382_v30 }
 0x32b   :  { %1385 = vmatpush3.bf16.msra.mxu1 %v1382_v30 }
 0x32e   :  { %1333 = vmatmul.mubr.msk.f32.vlgmr.msra.gmra.mrb[8].mxu1 %vm390_vm5, %v751_v50 }
 0x32f   :  { %1335 = vmatprep.mubr.msk.f32.mxu1 %vm390_vm5, %v752_v4 }
 0x332   :  { %1336 = vmatmul.mubr.msk.f32.gmra.mrb[10].mxu1 %vm390_vm5, %v753_v0 }
 0x333   :  { %1338 = vmatprep.mubr.msk.f32.mxu1 %vm390_vm5, %v754_v2 }
 0x336   :  { %1339 = vmatmul.mubr.msk.f32.gmra.mrb[12].mxu1 %vm390_vm5, %v755_v9 }
 0x337   :  { %1341 = vmatprep.mubr.msk.f32.mxu1 %vm390_vm5, %v756_v63 }
 0x33a   :  { %1342 = vmatmul.mubr.msk.f32.gmra.mrb[14].mxu1 %vm390_vm5, %v757_v6 }
 0x401   :  { %v1334_v5 = vpop.f32.mrb[8].mxu1 }
 0x402   :  { %v2010_v10 = vadd.f32 %v1334_v5, %v774_v62  ;;  %v896_v52 = vpop.f32.mrb[9].mxu1 }
 0x403   :  { %v2012_v11 = vadd.f32 %v896_v52, %v769_v1 }
 0x404   :  { %v2015_v13 = vmul.f32 100.0, %v2010_v10 }
 0x405   :  { %v2018_v7 = vmul.f32 100.0, %v2012_v11  ;;  %v1337_v55 = vpop.f32.mrb[10].mxu1 }
 0x406   :  { %v952_v16 = vmin.f32 %v2015_v13, 20.0  ;;  %v2021_v38 = vadd.f32 %v1337_v55, %v784_v3  ;;  %v906_v8 = vpop.f32.mrb[11].mxu1  ;;  %vm944_vm5 = vcmp.gt.f32.partialorder %v2015_v13, 20.0 }
 0x407   :  { %v951_v40 = vmin.f32 %v2018_v7, 20.0  ;;  %v2024_v39 = vadd.f32 %v906_v8, %v779_v12  ;;  %vm943_vm12 = vcmp.gt.f32.partialorder %v2018_v7, 20.0 }
 0x408   :  { %v961_v18 = vmul.f32 1.442695, %v952_v16  ;;  %v2027_v21 = vmul.f32 100.0, %v2021_v38 }
 0x409   :  { %v959_v45 = vmul.f32 1.442695, %v951_v40  ;;  %v2030_v23 = vmul.f32 100.0, %v2024_v39  ;;  %v1340_v48 = vpop.f32.mrb[12].mxu1 }
 0x40a   :  { %1469 = vpow2.f32 %v961_v18  ;;  %v954_v24 = vmin.f32 %v2027_v21, 20.0  ;;  %v2033_v53 = vadd.f32 %v1340_v48, %v794_v17  ;;  %v916_v31 = vpop.f32.mrb[13].mxu1  ;;  %vm946_vm0 = vcmp.gt.f32.partialorder %v2027_v21, 20.0 }
 0x40b   :  { %1471 = vpow2.f32 %v959_v45  ;;  %v953_v26 = vmin.f32 %v2030_v23, 20.0  ;;  %v2036_v14 = vadd.f32 %v916_v31, %v789_v37  ;;  %vm945_vm1 = vcmp.gt.f32.partialorder %v2030_v23, 20.0 }
 0x40c   :  { %v965_v43 = vmul.f32 1.442695, %v954_v24  ;;  %v2039_v20 = vmul.f32 100.0, %v2033_v53 }
 0x40d   :  { %v963_v46 = vmul.f32 1.442695, %v953_v26  ;;  %v2042_v28 = vmul.f32 100.0, %v2036_v14  ;;  %v1343_v32 = vpop.f32.mrb[14].mxu1 }
 0x40e   :  { %1473 = vpow2.f32 %v965_v43  ;;  %v956_v29 = vmin.f32 %v2039_v20, 20.0  ;;  %v2045_v22 = vadd.f32 %v1343_v32, %v804_v27  ;;  %v926_v51 = vpop.f32.mrb[15].mxu1  ;;  %vm948_vm4 = vcmp.gt.f32.partialorder %v2039_v20, 20.0 }
 0x40f   :  { %1475 = vpow2.f32 %v963_v46  ;;  %v955_v56 = vmin.f32 %v2042_v28, 20.0  ;;  %v2052_v42 = vadd.f32 %v926_v51, %v799_v34  ;;  %v1075_v46 = vpop.permute.xlu1 %1074  ;;  %vm947_vm6 = vcmp.gt.f32.partialorder %v2042_v28, 20.0 }
 0x410   :  { %v969_v33 = vmul.f32 1.442695, %v956_v29  ;;  %v2049_v41 = vmul.f32 100.0, %v2045_v22 }
 0x411   :  { %v967_v35 = vmul.f32 1.442695, %v955_v56  ;;  %v2055_v49 = vmul.f32 100.0, %v2052_v42 }
 0x412   :  { %1477 = vpow2.f32 %v969_v33  ;;  %v958_v36 = vmin.f32 %v2049_v41, 20.0  ;;  %vm950_vm9 = vcmp.gt.f32.partialorder %v2049_v41, 20.0 }
 0x413   :  { %1479 = vpow2.f32 %v967_v35  ;;  %v957_v15 = vmin.f32 %v2055_v49, 20.0  ;;  %vm949_vm10 = vcmp.gt.f32.partialorder %v2055_v49, 20.0 }
 0x414   :  { %v1470_v54 = vpop.eup %1469  ;;  %v973_v44 = vmul.f32 1.442695, %v958_v36 }
 0x415   :  { %v1472_v25 = vpop.eup %1471  ;;  %v984_v19 = vadd.f32 1.0, %v1470_v54  ;;  %v987_v58 = vmul.f32 -0.5, %v1470_v54  ;;  %v990_v2 = vand.u32 2147483647, %v1470_v54  ;;  %v971_v62 = vmul.f32 1.442695, %v957_v15 }
 0x416   :  { %v975_v57 = vadd.f32 1.0, %v1472_v25  ;;  %1481 = vpow2.f32 %v973_v44  ;;  %v978_v30 = vmul.f32 -0.5, %v1472_v25  ;;  %v981_v52 = vand.u32 2147483647, %v1472_v25 }
 0x417   :  { %1483 = vlog2.f32 %v984_v19  ;;  %v988_v0 = vadd.f32 1.0, %v987_v58  ;;  %vm2067_vm11 = vcmp.lt.f32.partialorder %v990_v2, 0.0004427343 }
 0x418   :  { %v1474_v61 = vpop.eup %1473  ;;  %1485 = vlog2.f32 %v975_v57  ;;  %v979_v3 = vadd.f32 1.0, %v978_v30  ;;  %vm982_vm13 = vcmp.lt.f32.partialorder %v981_v52, 0.0004427343 }
 0x419   :  { %v1476_v59 = vpop.eup %1475  ;;  %v1002_v60 = vadd.f32 1.0, %v1474_v61  ;;  %v1005_v9 = vmul.f32 -0.5, %v1474_v61  ;;  %v1008_v12 = vand.u32 2147483647, %v1474_v61  ;;  %v989_v8 = vmul.f32 %v1470_v54, %v988_v0  ;;  %v1080_v54 = vpop.permute.xlu0 %1079 }
 0x41a   :  { %v993_v47 = vadd.f32 1.0, %v1476_v59  ;;  %v996_v6 = vmul.f32 -0.5, %v1476_v59  ;;  %v999_v55 = vand.u32 2147483647, %v1476_v59  ;;  %v980_v31 = vmul.f32 %v1472_v25, %v979_v3 }
 0x41b   :  { %1487 = vlog2.f32 %v1002_v60  ;;  %v1006_v40 = vadd.f32 1.0, %v1005_v9  ;;  %vm2077_vm14 = vcmp.lt.f32.partialorder %v1008_v12, 0.0004427343 }
 0x41c   :  { %v2058_v50 = vpop.eup %1477  ;;  %1489 = vlog2.f32 %v993_v47  ;;  %v997_v48 = vadd.f32 1.0, %v996_v6  ;;  %vm2081_vm15 = vcmp.lt.f32.partialorder %v999_v55, 0.0004427343 }
 0x41d   :  { %v2060_v4 = vpop.eup %1479  ;;  %v1020_v63 = vadd.f32 1.0, %v2058_v50  ;;  %v1023_v37 = vmul.f32 -0.5, %v2058_v50  ;;  %v1007_v34 = vmul.f32 %v1474_v61, %v1006_v40  ;;  %v1026_v35 = vand.u32 2147483647, %v2058_v50  ;;  %v1090_v12 = vpop.permute.xlu0 %1089 }
 0x41e   :  { %v1011_v1 = vadd.f32 1.0, %v2060_v4  ;;  %v1014_v26 = vmul.f32 -0.5, %v2060_v4  ;;  %v998_v19 = vmul.f32 %v1476_v59, %v997_v48  ;;  %v1017_v0 = vand.u32 2147483647, %v2060_v4 }
 0x41f   :  { %1491 = vlog2.f32 %v1020_v63  ;;  %v1024_v57 = vadd.f32 1.0, %v1023_v37  ;;  %v1085_v63 = vpop.permute.xlu1 %1084  ;;  %vm1027_vm2 = vcmp.lt.f32.partialorder %v1026_v35, 0.0004427343 }
 0x420   :  { %v2065_v5 = vpop.eup %1481  ;;  %1493 = vlog2.f32 %v1011_v1  ;;  %v1015_v47 = vadd.f32 1.0, %v1014_v26  ;;  %vm1018_vm3 = vcmp.lt.f32.partialorder %v1017_v0, 0.0004427343 }
 0x421   :  { %v1484_v16 = vpop.eup %1483  ;;  %1495 = vpow2.f32 %v971_v62  ;;  %v1038_v43 = vadd.f32 1.0, %v2065_v5  ;;  %v1025_v6 = vmul.f32 %v2058_v50, %v1024_v57  ;;  %v1100_v26 = vpop.permute.xlu0 %1099  ;;  %v1044_v32 = vand.u32 2147483647, %v2065_v5 }
 0x422   :  { %v1486_v18 = vpop.eup %1485  ;;  %v986_v45 = vmul.f32 0.6931472, %v1484_v16  ;;  %v1016_v3 = vmul.f32 %v2060_v4, %v1015_v47 }
 0x423   :  { %v977_v24 = vmul.f32 0.6931472, %v1486_v18  ;;  %1497 = vlog2.f32 %v1038_v43  ;;  %v1041_v18 = vmul.f32 -0.5, %v2065_v5  ;;  %v1095_v4 = vpop.permute.xlu1 %1094  ;;  %vm1045_vm7 = vcmp.lt.f32.partialorder %v1044_v32, 0.0004427343 }
 0x424   :  { %v992_v27 = vsel %vm2067_vm11, %v989_v8, %v986_v45 }
 0x425   :  { %v1488_v51 = vpop.eup %1487  ;;  %v1048_v56 = vmul.f32 0.01, %v992_v27  ;;  %v983_v33 = vsel %vm982_vm13, %v980_v31, %v977_v24  ;;  %v1042_v43 = vadd.f32 1.0, %v1041_v18 }
 0x426   :  { %v1490_v36 = vpop.eup %1489  ;;  %v1047_v44 = vmul.f32 0.01, %v983_v33  ;;  %v1004_v25 = vmul.f32 0.6931472, %v1488_v51 }
 0x427   :  { %v1056_v58 = vsel %vm944_vm5, %v2010_v10, %v1048_v56  ;;  %v995_v60 = vmul.f32 0.6931472, %v1490_v36  ;;  %v1043_v28 = vmul.f32 %v2065_v5, %v1042_v43 }
 0x428   :  { %v1055_v15 = vsel %vm943_vm12, %v2012_v11, %v1047_v44  ;;  %v1113_v61 = vmul.f32 %v1080_v54, %v1056_v58  ;;  %v1010_v30 = vsel %vm2077_vm14, %v1007_v34, %v1004_v25  ;;  %v1110_v58 = vpop.permute.xlu0 %1109 }
 0x429   :  { %v1492_v2 = vpop.eup %1491  ;;  %v1112_v59 = vmul.f32 %v1075_v46, %v1055_v15  ;;  %v1050_v9 = vmul.f32 0.01, %v1010_v30  ;;  %v1001_v10 = vsel %vm2081_vm15, %v998_v19, %v995_v60  ;;  %v1105_v19 = vpop.permute.xlu1 %1104 }
 0x42a   :  { %v1494_v13 = vpop.eup %1493  ;;  %v1049_v7 = vmul.f32 0.01, %v1001_v10  ;;  %v1022_v11 = vmul.f32 0.6931472, %v1492_v2 }
 0x42b   :  { %v1120_v1 = vadd.f32 %v1113_v61, %v1112_v59  ;;  %v1013_v62 = vmul.f32 0.6931472, %v1494_v13  ;;  %v1496_v52 = vpop.eup %1495  ;;  %v1058_v21 = vsel %vm946_vm0, %v2021_v38, %v1050_v9  ;;  %v1138_v61 = vlaneseq }
 0x42c   :  { %v1057_v55 = vsel %vm945_vm1, %v2024_v39, %v1049_v7  ;;  %v1028_v16 = vsel %vm1027_vm2, %v1025_v6, %v1022_v11  ;;  %v1029_v40 = vadd.f32 1.0, %v1496_v52  ;;  %v1115_v45 = vmul.f32 %v1090_v12, %v1058_v21 }
 0x42d   :  { %v1114_v8 = vmul.f32 %v1085_v63, %v1057_v55  ;;  %v1052_v17 = vmul.f32 0.01, %v1028_v16  ;;  %v1019_v23 = vsel %vm1018_vm3, %v1016_v3, %v1013_v62  ;;  %v1498_v37 = vpop.eup %1497  ;;  %v1032_v27 = vmul.f32 -0.5, %v1496_v52  ;;  %v1136_v41 = vpop.permute.xlu1 %1135 }
 0x42e   :  { %v1051_v50 = vmul.f32 0.01, %v1019_v23  ;;  %1499 = vlog2.f32 %v1029_v40  ;;  %v1040_v29 = vmul.f32 0.6931472, %v1498_v37  ;;  %v1139_v2 = vshrl.u32 %v1138_v61, 7 }
 0x42f   :  { %v1121_v48 = vadd.f32 %v1120_v1, %v1114_v8  ;;  %v1060_v38 = vsel %vm948_vm4, %v2033_v53, %v1052_v17  ;;  %v1033_v56 = vadd.f32 1.0, %v1032_v27  ;;  %v1035_v53 = vand.u32 2147483647, %v1496_v52 }
 0x430   :  { %v1059_v39 = vsel %vm947_vm6, %v2036_v14, %v1051_v50  ;;  %v1117_v20 = vmul.f32 %v1100_v26, %v1060_v38  ;;  %v1046_v33 = vsel %vm1045_vm7, %v1043_v28, %v1040_v29  ;;  %v1140_v9 = vsub.s32 0, %v1139_v2 }
 0x431   :  { %v1116_v24 = vmul.f32 %v1095_v4, %v1059_v39  ;;  %v1122_v31 = vadd.f32 %v1121_v48, %v1115_v45  ;;  %v1034_v35 = vmul.f32 %v1496_v52, %v1033_v56  ;;  %v1054_v36 = vmul.f32 0.01, %v1046_v33 }
 0x432   :  { %vm1036_vm8 = vcmp.lt.f32.partialorder %v1035_v53, 0.0004427343  ;;  %v1141_v63 = vrot.slane %v1136_v41, %v1140_v9 }
 0x433   :  { %v1123_v46 = vadd.f32 %v1122_v31, %v1116_v24  ;;  %v1062_v25 = vsel %vm950_vm9, %v2045_v22, %v1054_v36 }
 0x434   :  { %v1119_v60 = vmul.f32 %v1110_v58, %v1062_v25 }
 0x435   :  { %v1124_v51 = vadd.f32 %v1123_v46, %v1117_v20 }
 0x438   :  { %v1500_v34 = vpop.eup %1499 }
 0x439   :  { %v1031_v14 = vmul.f32 0.6931472, %v1500_v34 }
 0x43b   :  { %v1037_v54 = vsel %vm1036_vm8, %v1034_v35, %v1031_v14 }
 0x43c   :  { %v1053_v44 = vmul.f32 0.01, %v1037_v54 }
 0x43e   :  { %v1061_v5 = vsel %vm949_vm10, %v2052_v42, %v1053_v44 }
 0x43f   :  { %v1118_v57 = vmul.f32 %v1105_v19, %v1061_v5 }
 0x441   :  { %v1125_v47 = vadd.f32 %v1124_v51, %v1118_v57 }
 0x443   :  { %v1126_v15 = vadd.f32 %v1125_v47, %v1119_v60 }
 0x445   :  { %v1127_v30 = vrot.slane %v1126_v15, 4 }
 0x447   :  { %v1128_v0 = vadd.f32 %v1127_v30, %v1126_v15 }
 0x449   :  { %v1129_v59 = vrot.slane %v1128_v0, 2 }
 0x44b   :  { %v1130_v10 = vadd.f32 %v1129_v59, %v1128_v0 }
 0x44d   :  { %v1131_v13 = vrot.slane %v1130_v10, 1 }
 0x44f   :  { %v1132_v49 = vadd.f32 %v1131_v13, %v1130_v10 }
 0x451   :  { %v1142_v22 = vadd.f32 %v1141_v63, %v1132_v49 }
 0x453   :  { %v1190_v7 = vmul.f32 10.0, %v1142_v22 }
 0x455   :  { %v1145_v11 = vmul.f32 1.442695, %v1190_v7 }
 0x457   :  { %1501 = vpow2.f32 %v1145_v11 }
 0x461   :  { %v1502_v42 = vpop.eup %1501 }
 0x462   :  { %v1147_v6 = vadd.f32 1.0, %v1502_v42 }
 0x464   :  { %1503 = vrcp.f32 %v1147_v6 }
 0x46e   :  { %v1504_v1 = vpop.eup %1503 }
 0x46f   :  { %1150 = vst [vmem:[%s2126_s9] sm:$0x1] %v1504_v1 }

</bundles_post_ra>
